<compile_context>
chip_gen: v7x
topology: tpu7x:2x2x1
jax: 0.10.0
libtpu: 0.0.40
codegen_flags: <defaults>
</compile_context>

<pallas_src>
import numpy as np

import jax
import jax.numpy as jnp
from jax.experimental import pallas as pl
from jax.experimental.pallas import tpu as pltpu


# ---------------- configuration (mirrors HDeconv.__init__ arguments) -----------------
TARGET_SHAPES   = [(4, 8), (8,), (6, 6, 2)]      # 112 target weights total
HYPER_IMG_SHAPE = (16, 16)                       # (width, height), 1 output channel
NUM_LAYERS      = 3                              # FC layer + 2 transpose-conv layers
NUM_FILTERS     = [16, 8]                        # per-hidden-layer channel counts
KERNEL_SIZE     = 5
SA_UNITS        = (1,)                           # self-attention after layer index 1
COND_IN_SIZE    = 8
NUM_COND_EMBS   = 2
S0 = HYPER_IMG_SHAPE[0] // (2 ** (NUM_LAYERS - 1))   # initial feature-map size = 4

C0, C1  = NUM_FILTERS                            # 16, 8
H1      = 2 * S0                                 # feature-map size after conv 1 (8)
N1      = H1 * H1                                # spatial positions after conv 1 (64)
OUT_PIX = HYPER_IMG_SHAPE[0] * HYPER_IMG_SHAPE[1]    # 256 hyper-image pixels

VMEM = pl.BlockSpec(memory_space=pltpu.MemorySpace.VMEM)
SMEM = pl.BlockSpec(memory_space=pltpu.MemorySpace.SMEM)


# --------------------------------- fused Pallas kernel --------------------------------
def _hdeconv_fused_kernel(emb_ref, fcw_ref, fcb_ref, w1_ref, b1_ref,
                          wqkv_ref, bqkv_ref, w2_ref, scal_ref,
                          out_ref, xt_ref, h2f_ref):
    """Entire HDeconv forward for a batch of condition embeddings.

    Inputs (VMEM unless noted):
      emb   (B, 8)        condition embeddings
      fcw   (8, 256)      FC weight, fcb (1, 256) FC bias (columns = NCHW flat)
      w1    (256, 512)    dense deconv-1 matrix: rows NCHW-in, cols (c, y*8+x)
      b1    (1, 512)      deconv-1 bias tiled over the 64 positions per channel
      wqkv  (10, 8)       fused [q; k; v] 1x1 projections (rows: q, k, v0..v7)
      bqkv  (10, 1)       fused [bq; bk; bv] biases (column -> broadcasts over n)
      w2    (512, 256)    dense deconv-2 matrix: rows (c, n) NCHW-in, cols (oy,ox)
      scal  (2,)  SMEM    [gamma, deconv-2 bias]
    Scratch:
      xt    (B*8, 64)     channels-on-sublanes copy of the post-ReLU deconv-1 map
      h2f   (B, 512)      NCHW-flat post-attention map (deconv-2 input)
    Output:
      out   (B, 256)      flattened hyper image (lane-dense)
    """
    B = out_ref.shape[0]
    f32 = jnp.float32

    # ---- layer 0: fully connected + ReLU (flat order == torch NCHW view) ----------
    h0 = jnp.maximum(
        jnp.dot(emb_ref[...], fcw_ref[...], preferred_element_type=f32)
        + fcb_ref[...], 0.0)                                          # (B, 256)

    # ---- layer 1: stride-2 transpose conv as ONE dense matmul + ReLU --------------
    h1 = jnp.maximum(
        jnp.dot(h0, w1_ref[...], preferred_element_type=f32)
        + b1_ref[...], 0.0)                                           # (B, 512) lane-dense

    # Re-tile h1 into channels-on-sublanes blocks (one (1,64) row per (b, c)) so the
    # attention block can use plain 2D matmuls; pure static-slice VMEM stores.
    for b in range(B):
        for c in range(C1):
            xt_ref[b * C1 + c:b * C1 + c + 1, :] = h1[b:b + 1, c * N1:(c + 1) * N1]

    gamma = scal_ref[0]
    bias2 = scal_ref[1]

    # 64x64 identity, built once from 2-D iotas (used for the rank-1 energy below).
    eye = (jax.lax.broadcasted_iota(jnp.int32, (N1, N1), 0) ==
           jax.lax.broadcasted_iota(jnp.int32, (N1, N1), 1)).astype(f32)

    # ---- SAGAN self-attention after layer 1 (c8 = C1 // 8 = 1) --------------------
    for b in range(B):
        xb = xt_ref[b * C1:(b + 1) * C1, :]                           # (8, 64) = (C, HW)

        # fused q/k/v projection: one small matmul instead of three
        qkv = jnp.dot(wqkv_ref[...], xb, preferred_element_type=f32) + bqkv_ref[...]
        q = qkv[0:1, :]                                               # (1, 64)
        k = qkv[1:2, :]                                               # (1, 64)
        v = qkv[2:2 + C1, :]                                          # (8, 64)

        # energy^T[m, n] = k[m] * q[n]  (rank-1). Instead of a K=1 MXU matmul or an
        # unsupported lane->sublane relayout, build diag(k) with a sublane broadcast
        # + identity mask and push one 64x64x64 matmul through the MXU.
        k_diag = jnp.broadcast_to(k, (N1, N1)) * eye                  # diag(k)
        energy_t = jnp.dot(k_diag, jnp.broadcast_to(q, (N1, N1)),
                           preferred_element_type=f32)                # (64, 64)

        # softmax over the key axis m (= sublane axis); EUP reciprocal for the denom
        p = jnp.exp(energy_t - jnp.max(energy_t, axis=0, keepdims=True))
        attn_t = p * pl.reciprocal(jnp.sum(p, axis=0, keepdims=True), approx=True)

        out_t = jnp.dot(v, attn_t, preferred_element_type=f32)        # (8, 64)
        h2 = gamma * out_t + xb                                       # residual + gamma

        # flatten back to NCHW order (c, n) for the deconv-2 matmul
        for c in range(C1):
            h2f_ref[b:b + 1, c * N1:(c + 1) * N1] = h2[c:c + 1, :]

    # ---- layer 2: output transpose conv as ONE dense matmul -> hyper image --------
    out_ref[...] = (jnp.dot(h2f_ref[...], w2_ref[...], preferred_element_type=f32)
                    + bias2)                                          # (B, 256) lane-dense


@jax.jit
def _hyper_image(emb, ops):
    """Single fused pallas_call: embeddings -> flattened hyper image (B, 256)."""
    B = emb.shape[0]
    return pl.pallas_call(
        _hdeconv_fused_kernel,
        out_shape=jax.ShapeDtypeStruct((B, OUT_PIX), jnp.float32),
        in_specs=[VMEM] * 8 + [SMEM],
        out_specs=VMEM,
        scratch_shapes=[pltpu.VMEM((B * C1, N1), jnp.float32),
                        pltpu.VMEM((B, C1 * N1), jnp.float32)],
    )(emb, ops['fc_w'], ops['fc_b'], ops['w1'], ops['b1'],
      ops['wqkv'], ops['bqkv'], ops['w2'], ops['scal'])


# ------------------------ one-time weight preprocessing (host) ------------------------
def _deconv_as_matrix(w_pt, H, W, *, stride, padding, output_padding):
    """Dense matrix M with y_flat = x_flat @ M for a PyTorch ConvTranspose2d.

    x_flat is NCHW-flattened (ci, iy, ix); columns are NCHW-flattened (co, oy, ox).
    Uses the scatter form  oy = iy*stride - padding + ky  of the transpose conv.
    """
    w = np.asarray(w_pt, np.float32)                      # (Cin, Cout, K, K)
    Cin, Cout, K, _ = w.shape
    Ho = (H - 1) * stride - 2 * padding + K + output_padding
    Wo = (W - 1) * stride - 2 * padding + K + output_padding
    M = np.zeros((Cin * H * W, Cout * Ho * Wo), np.float32)
    for ci in range(Cin):
        for iy in range(H):
            for ix in range(W):
                row = (ci * H + iy) * W + ix
                for co in range(Cout):
                    for ky in range(K):
                        oy = iy * stride - padding + ky
                        if not 0 <= oy < Ho:
                            continue
                        for kx in range(K):
                            ox = ix * stride - padding + kx
                            if not 0 <= ox < Wo:
                                continue
                            M[row, (co * Ho + oy) * Wo + ox] += w[ci, co, ky, kx]
    return M


def prepare_operands(params):
    """Precompute (once, outside the jitted hot path) the kernel operands:
    dense deconv matrices, tiled biases and the fused q/k/v projection."""
    w1 = _deconv_as_matrix(params['dc1_w'], S0, S0,
                           stride=2, padding=2, output_padding=1)          # (256, 512)
    w2 = _deconv_as_matrix(params['dc2_w'], H1, H1,
                           stride=2, padding=2, output_padding=1)          # (512, 256)
    b1 = np.repeat(np.asarray(params['dc1_b'], np.float32), N1)[None, :]   # (1, 512)

    wq = np.asarray(params['sa_wq'], np.float32)                           # (8, 1)
    wk = np.asarray(params['sa_wk'], np.float32)                           # (8, 1)
    wv = np.asarray(params['sa_wv'], np.float32)                           # (8, 8)
    wqkv = np.concatenate([wq.T, wk.T, wv.T], axis=0)                      # (10, 8)
    bqkv = np.concatenate([np.asarray(params['sa_bq'], np.float32),
                           np.asarray(params['sa_bk'], np.float32),
                           np.asarray(params['sa_bv'], np.float32)])[:, None]   # (10, 1)
    scal = np.array([float(params['sa_gamma']),
                     float(np.asarray(params['dc2_b'])[0])], np.float32)

    return {
        'fc_w': jnp.asarray(params['fc_w'], jnp.float32),
        'fc_b': jnp.asarray(params['fc_b'], jnp.float32).reshape(1, -1),
        'w1': jnp.asarray(w1), 'b1': jnp.asarray(b1),
        'wqkv': jnp.asarray(wqkv), 'bqkv': jnp.asarray(bqkv),
        'w2': jnp.asarray(w2),
        'scal': jnp.asarray(scal),
    }


# ------------------------------- parameters -------------------------------------------
def init_params(key):
    ks = jax.random.split(key, 16)

    def nrm(k, shape, scale=0.1):
        return scale * jax.random.normal(k, shape, dtype=jnp.float32)

    c8 = max(1, C1 // 8)
    return {
        'cond_embs': nrm(ks[0], (NUM_COND_EMBS, COND_IN_SIZE), 1.0),
        'fc_w': nrm(ks[1], (COND_IN_SIZE, C0 * S0 * S0)),
        'fc_b': nrm(ks[2], (C0 * S0 * S0,)),
        # ConvTranspose2d weight layout: (Cin, Cout, K, K)
        'dc1_w': nrm(ks[3], (C0, C1, KERNEL_SIZE, KERNEL_SIZE)),
        'dc1_b': nrm(ks[4], (C1,)),
        'dc2_w': nrm(ks[5], (C1, 1, KERNEL_SIZE, KERNEL_SIZE)),
        'dc2_b': nrm(ks[6], (1,)),
        # SAGAN self-attention (1x1 convs expressed as (C, C') matrices)
        'sa_wq': nrm(ks[7], (C1, c8)),
        'sa_bq': nrm(ks[8], (c8,)),
        'sa_wk': nrm(ks[9], (C1, c8)),
        'sa_bk': nrm(ks[10], (c8,)),
        'sa_wv': nrm(ks[11], (C1, C1)),
        'sa_bv': nrm(ks[12], (C1,)),
        # SAGAN initializes gamma to 0 (identity attention); use a deterministic
        # nonzero value so the attention path is numerically exercised.
        'sa_gamma': jnp.array(0.5, dtype=jnp.float32),
    }


# ------------------------------- forward -----------------------------------------------
def chunk_hyper_image(flat):
    """Split the flattened hyper image into target-shaped weight tensors.
    Host-side / outside jit (perf review: keep the chunking out of the hot path)."""
    flat = np.asarray(flat)
    B = flat.shape[0]
    per_shape, off = [], 0
    for s in TARGET_SHAPES:
        n = int(np.prod(s))
        per_shape.append(flat[:, off:off + n].reshape((B,) + tuple(s)))
        off += n
    return [[per_shape[j][b] for j in range(len(TARGET_SHAPES))] for b in range(B)]


def hdeconv_forward(params, ops, cond_ids):
    """cond_ids -> list (per condition) of target-shaped weight tensors, plus the
    flattened hyper image (B, W*H*C)."""
    emb = params['cond_embs'][cond_ids]               # (B, cond_in_size)
    flat = _hyper_image(emb, ops)                     # single fused Pallas kernel
    weights = chunk_hyper_image(flat)                 # remaining pixels discarded
    # TODO(synk): ret_format='flattened'/'unsqueezed', unconditional inputs, batch
    # norm and spectral norm options of HMLP/HDeconv are not implemented (defaults
    # are off in the reference).
    return weights, flat


# ------------------------------- pure-JAX reference ------------------------------------
def _ref_conv_transpose(x_nchw, w_pt, b, stride=2, padding=2, output_padding=1):
    K = w_pt.shape[-1]
    w_flip = jnp.transpose(w_pt[:, :, ::-1, ::-1], (1, 0, 2, 3))   # (Cout, Cin, K, K)
    lo, hi = K - 1 - padding, K - 1 - padding + output_padding
    out = jax.lax.conv_general_dilated(
        x_nchw, w_flip, window_strides=(1, 1),
        padding=((lo, hi), (lo, hi)), lhs_dilation=(stride, stride),
        dimension_numbers=('NCHW', 'OIHW', 'NCHW'))
    return out + b.reshape(1, -1, 1, 1)


def _ref_self_attention(x_nchw, p):
    B, C, H, W = x_nchw.shape
    xf = x_nchw.reshape(B, C, H * W)
    q = jnp.einsum('cd,bcn->bdn', p['sa_wq'], xf) + p['sa_bq'].reshape(1, -1, 1)
    k = jnp.einsum('cd,bcn->bdn', p['sa_wk'], xf) + p['sa_bk'].reshape(1, -1, 1)
    v = jnp.einsum('cd,bcn->bdn', p['sa_wv'], xf) + p['sa_bv'].reshape(1, -1, 1)
    energy = jnp.einsum('bdn,bdm->bnm', q, k)
    attn = jax.nn.softmax(energy, axis=-1)
    out = jnp.einsum('bcm,bnm->bcn', v, attn)
    return (p['sa_gamma'] * out + xf).reshape(B, C, H, W)


def reference_forward(params, cond_ids):
    emb = params['cond_embs'][cond_ids]
    B = emb.shape[0]
    h = jnp.maximum(emb @ params['fc_w'] + params['fc_b'], 0.0)
    h = h.reshape(B, C0, S0, S0)
    h = jnp.maximum(_ref_conv_transpose(h, params['dc1_w'], params['dc1_b']), 0.0)
    h = _ref_self_attention(h, params)
    h = _ref_conv_transpose(h, params['dc2_w'], params['dc2_b'])
    return h.reshape(B, -1)


# ------------------------------- main ---------------------------------------------------
if __name__ == "__main__":
    key = jax.random.PRNGKey(0)
    params = init_params(key)
    ops = prepare_operands(params)                    # one-time, outside the hot path
    cond_ids = jnp.array([0, 1], dtype=jnp.int32)

    weights, flat = hdeconv_forward(params, ops, cond_ids)
    flat = jax.block_until_ready(flat)

    ref = jax.block_until_ready(reference_forward(params, cond_ids))
    assert flat.shape == (2, OUT_PIX)
    # Tolerance relaxed vs. pure f32 because the softmax denominator uses the EUP
    # approximate reciprocal (pl.reciprocal(approx=True)); everything else is f32.
    np.testing.assert_allclose(np.asarray(flat), np.asarray(ref), rtol=2e-3, atol=2e-3)
    assert [tuple(w.shape) for w in weights[0]] == [tuple(s) for s in TARGET_SHAPES]

    print("KERNEL_OK")
</pallas_src>

<mosaic_0001>
module attributes {stable_mosaic.version = 11 : i64} {
  func.func @_hdeconv_fused_kernel(%arg0: memref<2x8xf32, #tpu.memory_space<vmem>>, %arg1: memref<8x256xf32, #tpu.memory_space<vmem>>, %arg2: memref<1x256xf32, #tpu.memory_space<vmem>>, %arg3: memref<256x512xf32, #tpu.memory_space<vmem>>, %arg4: memref<1x512xf32, #tpu.memory_space<vmem>>, %arg5: memref<10x8xf32, #tpu.memory_space<vmem>>, %arg6: memref<10x1xf32, #tpu.memory_space<vmem>>, %arg7: memref<512x256xf32, #tpu.memory_space<vmem>>, %arg8: memref<2xf32, #tpu.memory_space<smem>>, %arg9: memref<2x256xf32, #tpu.memory_space<vmem>>, %arg10: memref<16x64xf32, #tpu.memory_space<vmem>>, %arg11: memref<2x512xf32, #tpu.memory_space<vmem>>) attributes {dimension_semantics = [], scalar_prefetch = 0 : i64, scratch_operands = 2 : i64, tpu.core_type = #tpu.core_type<tc>} {
    %c0 = arith.constant 0 : index
    %c0_0 = arith.constant 0 : index
    %0 = vector.load %arg0[%c0, %c0_0] : memref<2x8xf32, #tpu.memory_space<vmem>>, vector<2x8xf32>
    %c0_1 = arith.constant 0 : index
    %c0_2 = arith.constant 0 : index
    %1 = vector.load %arg1[%c0_1, %c0_2] : memref<8x256xf32, #tpu.memory_space<vmem>>, vector<8x256xf32>
    %cst = arith.constant dense<0.000000e+00> : vector<2x256xf32>
    %2 = tpu.matmul %0, %1, %cst {dimension_numbers = #tpu.dot_dimension_numbers<[1], [0], [0], [1], [0, 0, 1, 1], [], []>} : vector<2x8xf32>, vector<8x256xf32>, vector<2x256xf32> -> vector<2x256xf32>
    %c0_3 = arith.constant 0 : index
    %c0_4 = arith.constant 0 : index
    %3 = vector.load %arg2[%c0_3, %c0_4] : memref<1x256xf32, #tpu.memory_space<vmem>>, vector<1x256xf32>
    %4 = vector.broadcast %3 : vector<1x256xf32> to vector<2x256xf32>
    %5 = arith.addf %2, %4 : vector<2x256xf32>
    %cst_5 = arith.constant 0.000000e+00 : f32
    %6 = vector.broadcast %cst_5 : f32 to vector<2x256xf32>
    %7 = arith.maximumf %5, %6 : vector<2x256xf32>
    %c0_6 = arith.constant 0 : index
    %c0_7 = arith.constant 0 : index
    %8 = vector.load %arg3[%c0_6, %c0_7] : memref<256x512xf32, #tpu.memory_space<vmem>>, vector<256x512xf32>
    %cst_8 = arith.constant dense<0.000000e+00> : vector<2x512xf32>
    %9 = tpu.matmul %7, %8, %cst_8 {dimension_numbers = #tpu.dot_dimension_numbers<[1], [0], [0], [1], [0, 0, 1, 1], [], []>} : vector<2x256xf32>, vector<256x512xf32>, vector<2x512xf32> -> vector<2x512xf32>
    %c0_9 = arith.constant 0 : index
    %c0_10 = arith.constant 0 : index
    %10 = vector.load %arg4[%c0_9, %c0_10] : memref<1x512xf32, #tpu.memory_space<vmem>>, vector<1x512xf32>
    %11 = vector.broadcast %10 : vector<1x512xf32> to vector<2x512xf32>
    %12 = arith.addf %9, %11 : vector<2x512xf32>
    %cst_11 = arith.constant 0.000000e+00 : f32
    %13 = vector.broadcast %cst_11 : f32 to vector<2x512xf32>
    %14 = arith.maximumf %12, %13 : vector<2x512xf32>
    %15 = vector.extract_strided_slice %14 {offsets = [0, 0], sizes = [1, 64], strides = [1, 1]} : vector<2x512xf32> to vector<1x64xf32>
    %c0_12 = arith.constant 0 : index
    %c0_13 = arith.constant 0 : index
    %16 = vector.load %arg10[%c0_12, %c0_13] : memref<16x64xf32, #tpu.memory_space<vmem>>, vector<1x64xf32>
    tpu.vector_store %arg10[%c0_12, %c0_13], %15 {strides = array<i32>} : memref<16x64xf32, #tpu.memory_space<vmem>>, vector<1x64xf32>,
    %17 = vector.extract_strided_slice %14 {offsets = [0, 64], sizes = [1, 64], strides = [1, 1]} : vector<2x512xf32> to vector<1x64xf32>
    %c1 = arith.constant 1 : index
    %c0_14 = arith.constant 0 : index
    %18 = vector.load %arg10[%c1, %c0_14] : memref<16x64xf32, #tpu.memory_space<vmem>>, vector<1x64xf32>
    tpu.vector_store %arg10[%c1, %c0_14], %17 {strides = array<i32>} : memref<16x64xf32, #tpu.memory_space<vmem>>, vector<1x64xf32>,
    %19 = vector.extract_strided_slice %14 {offsets = [0, 128], sizes = [1, 64], strides = [1, 1]} : vector<2x512xf32> to vector<1x64xf32>
    %c2 = arith.constant 2 : index
    %c0_15 = arith.constant 0 : index
    %20 = vector.load %arg10[%c2, %c0_15] : memref<16x64xf32, #tpu.memory_space<vmem>>, vector<1x64xf32>
    tpu.vector_store %arg10[%c2, %c0_15], %19 {strides = array<i32>} : memref<16x64xf32, #tpu.memory_space<vmem>>, vector<1x64xf32>,
    %21 = vector.extract_strided_slice %14 {offsets = [0, 192], sizes = [1, 64], strides = [1, 1]} : vector<2x512xf32> to vector<1x64xf32>
    %c3 = arith.constant 3 : index
    %c0_16 = arith.constant 0 : index
    %22 = vector.load %arg10[%c3, %c0_16] : memref<16x64xf32, #tpu.memory_space<vmem>>, vector<1x64xf32>
    tpu.vector_store %arg10[%c3, %c0_16], %21 {strides = array<i32>} : memref<16x64xf32, #tpu.memory_space<vmem>>, vector<1x64xf32>,
    %23 = vector.extract_strided_slice %14 {offsets = [0, 256], sizes = [1, 64], strides = [1, 1]} : vector<2x512xf32> to vector<1x64xf32>
    %c4 = arith.constant 4 : index
    %c0_17 = arith.constant 0 : index
    %24 = vector.load %arg10[%c4, %c0_17] : memref<16x64xf32, #tpu.memory_space<vmem>>, vector<1x64xf32>
    tpu.vector_store %arg10[%c4, %c0_17], %23 {strides = array<i32>} : memref<16x64xf32, #tpu.memory_space<vmem>>, vector<1x64xf32>,
    %25 = vector.extract_strided_slice %14 {offsets = [0, 320], sizes = [1, 64], strides = [1, 1]} : vector<2x512xf32> to vector<1x64xf32>
    %c5 = arith.constant 5 : index
    %c0_18 = arith.constant 0 : index
    %26 = vector.load %arg10[%c5, %c0_18] : memref<16x64xf32, #tpu.memory_space<vmem>>, vector<1x64xf32>
    tpu.vector_store %arg10[%c5, %c0_18], %25 {strides = array<i32>} : memref<16x64xf32, #tpu.memory_space<vmem>>, vector<1x64xf32>,
    %27 = vector.extract_strided_slice %14 {offsets = [0, 384], sizes = [1, 64], strides = [1, 1]} : vector<2x512xf32> to vector<1x64xf32>
    %c6 = arith.constant 6 : index
    %c0_19 = arith.constant 0 : index
    %28 = vector.load %arg10[%c6, %c0_19] : memref<16x64xf32, #tpu.memory_space<vmem>>, vector<1x64xf32>
    tpu.vector_store %arg10[%c6, %c0_19], %27 {strides = array<i32>} : memref<16x64xf32, #tpu.memory_space<vmem>>, vector<1x64xf32>,
    %29 = vector.extract_strided_slice %14 {offsets = [0, 448], sizes = [1, 64], strides = [1, 1]} : vector<2x512xf32> to vector<1x64xf32>
    %c7 = arith.constant 7 : index
    %c0_20 = arith.constant 0 : index
    %30 = vector.load %arg10[%c7, %c0_20] : memref<16x64xf32, #tpu.memory_space<vmem>>, vector<1x64xf32>
    tpu.vector_store %arg10[%c7, %c0_20], %29 {strides = array<i32>} : memref<16x64xf32, #tpu.memory_space<vmem>>, vector<1x64xf32>,
    %31 = vector.extract_strided_slice %14 {offsets = [1, 0], sizes = [1, 64], strides = [1, 1]} : vector<2x512xf32> to vector<1x64xf32>
    %c8 = arith.constant 8 : index
    %c0_21 = arith.constant 0 : index
    %32 = vector.load %arg10[%c8, %c0_21] : memref<16x64xf32, #tpu.memory_space<vmem>>, vector<1x64xf32>
    tpu.vector_store %arg10[%c8, %c0_21], %31 {strides = array<i32>} : memref<16x64xf32, #tpu.memory_space<vmem>>, vector<1x64xf32>,
    %33 = vector.extract_strided_slice %14 {offsets = [1, 64], sizes = [1, 64], strides = [1, 1]} : vector<2x512xf32> to vector<1x64xf32>
    %c9 = arith.constant 9 : index
    %c0_22 = arith.constant 0 : index
    %34 = vector.load %arg10[%c9, %c0_22] : memref<16x64xf32, #tpu.memory_space<vmem>>, vector<1x64xf32>
    tpu.vector_store %arg10[%c9, %c0_22], %33 {strides = array<i32>} : memref<16x64xf32, #tpu.memory_space<vmem>>, vector<1x64xf32>,
    %35 = vector.extract_strided_slice %14 {offsets = [1, 128], sizes = [1, 64], strides = [1, 1]} : vector<2x512xf32> to vector<1x64xf32>
    %c10 = arith.constant 10 : index
    %c0_23 = arith.constant 0 : index
    %36 = vector.load %arg10[%c10, %c0_23] : memref<16x64xf32, #tpu.memory_space<vmem>>, vector<1x64xf32>
    tpu.vector_store %arg10[%c10, %c0_23], %35 {strides = array<i32>} : memref<16x64xf32, #tpu.memory_space<vmem>>, vector<1x64xf32>,
    %37 = vector.extract_strided_slice %14 {offsets = [1, 192], sizes = [1, 64], strides = [1, 1]} : vector<2x512xf32> to vector<1x64xf32>
    %c11 = arith.constant 11 : index
    %c0_24 = arith.constant 0 : index
    %38 = vector.load %arg10[%c11, %c0_24] : memref<16x64xf32, #tpu.memory_space<vmem>>, vector<1x64xf32>
    tpu.vector_store %arg10[%c11, %c0_24], %37 {strides = array<i32>} : memref<16x64xf32, #tpu.memory_space<vmem>>, vector<1x64xf32>,
    %39 = vector.extract_strided_slice %14 {offsets = [1, 256], sizes = [1, 64], strides = [1, 1]} : vector<2x512xf32> to vector<1x64xf32>
    %c12 = arith.constant 12 : index
    %c0_25 = arith.constant 0 : index
    %40 = vector.load %arg10[%c12, %c0_25] : memref<16x64xf32, #tpu.memory_space<vmem>>, vector<1x64xf32>
    tpu.vector_store %arg10[%c12, %c0_25], %39 {strides = array<i32>} : memref<16x64xf32, #tpu.memory_space<vmem>>, vector<1x64xf32>,
    %41 = vector.extract_strided_slice %14 {offsets = [1, 320], sizes = [1, 64], strides = [1, 1]} : vector<2x512xf32> to vector<1x64xf32>
    %c13 = arith.constant 13 : index
    %c0_26 = arith.constant 0 : index
    %42 = vector.load %arg10[%c13, %c0_26] : memref<16x64xf32, #tpu.memory_space<vmem>>, vector<1x64xf32>
    tpu.vector_store %arg10[%c13, %c0_26], %41 {strides = array<i32>} : memref<16x64xf32, #tpu.memory_space<vmem>>, vector<1x64xf32>,
    %43 = vector.extract_strided_slice %14 {offsets = [1, 384], sizes = [1, 64], strides = [1, 1]} : vector<2x512xf32> to vector<1x64xf32>
    %c14 = arith.constant 14 : index
    %c0_27 = arith.constant 0 : index
    %44 = vector.load %arg10[%c14, %c0_27] : memref<16x64xf32, #tpu.memory_space<vmem>>, vector<1x64xf32>
    tpu.vector_store %arg10[%c14, %c0_27], %43 {strides = array<i32>} : memref<16x64xf32, #tpu.memory_space<vmem>>, vector<1x64xf32>,
    %45 = vector.extract_strided_slice %14 {offsets = [1, 448], sizes = [1, 64], strides = [1, 1]} : vector<2x512xf32> to vector<1x64xf32>
    %c15 = arith.constant 15 : index
    %c0_28 = arith.constant 0 : index
    %46 = vector.load %arg10[%c15, %c0_28] : memref<16x64xf32, #tpu.memory_space<vmem>>, vector<1x64xf32>
    tpu.vector_store %arg10[%c15, %c0_28], %45 {strides = array<i32>} : memref<16x64xf32, #tpu.memory_space<vmem>>, vector<1x64xf32>,
    %c0_29 = arith.constant 0 : index
    %47 = memref.load %arg8[%c0_29] : memref<2xf32, #tpu.memory_space<smem>>
    %c1_30 = arith.constant 1 : index
    %48 = memref.load %arg8[%c1_30] : memref<2xf32, #tpu.memory_space<smem>>
    %49 = tpu.iota {dimensions = array<i32: 0>} : vector<64x64xi32>
    %50 = tpu.iota {dimensions = array<i32: 1>} : vector<64x64xi32>
    %51 = arith.cmpi eq, %49, %50 : vector<64x64xi32>
    %52 = arith.extui %51 : vector<64x64xi1> to vector<64x64xi32>
    %53 = arith.sitofp %52 : vector<64x64xi32> to vector<64x64xf32>
    %c0_31 = arith.constant 0 : index
    %c0_32 = arith.constant 0 : index
    %54 = vector.load %arg10[%c0_31, %c0_32] : memref<16x64xf32, #tpu.memory_space<vmem>>, vector<8x64xf32>
    %c0_33 = arith.constant 0 : index
    %c0_34 = arith.constant 0 : index
    %55 = vector.load %arg5[%c0_33, %c0_34] : memref<10x8xf32, #tpu.memory_space<vmem>>, vector<10x8xf32>
    %cst_35 = arith.constant dense<0.000000e+00> : vector<10x64xf32>
    %56 = tpu.matmul %55, %54, %cst_35 {dimension_numbers = #tpu.dot_dimension_numbers<[1], [0], [0], [1], [0, 0, 1, 1], [], []>} : vector<10x8xf32>, vector<8x64xf32>, vector<10x64xf32> -> vector<10x64xf32>
    %c0_36 = arith.constant 0 : index
    %c0_37 = arith.constant 0 : index
    %57 = vector.load %arg6[%c0_36, %c0_37] : memref<10x1xf32, #tpu.memory_space<vmem>>, vector<10x1xf32>
    %58 = vector.broadcast %57 : vector<10x1xf32> to vector<10x64xf32>
    %59 = arith.addf %56, %58 : vector<10x64xf32>
    %60 = vector.extract_strided_slice %59 {offsets = [0, 0], sizes = [1, 64], strides = [1, 1]} : vector<10x64xf32> to vector<1x64xf32>
    %61 = vector.extract_strided_slice %59 {offsets = [1, 0], sizes = [1, 64], strides = [1, 1]} : vector<10x64xf32> to vector<1x64xf32>
    %62 = vector.extract_strided_slice %59 {offsets = [2, 0], sizes = [8, 64], strides = [1, 1]} : vector<10x64xf32> to vector<8x64xf32>
    %63 = vector.shape_cast %61 : vector<1x64xf32> to vector<1x64xf32>
    %64 = vector.broadcast %63 : vector<1x64xf32> to vector<64x64xf32>
    %65 = arith.mulf %64, %53 : vector<64x64xf32>
    %66 = vector.shape_cast %60 : vector<1x64xf32> to vector<1x64xf32>
    %67 = vector.broadcast %66 : vector<1x64xf32> to vector<64x64xf32>
    %cst_38 = arith.constant dense<0.000000e+00> : vector<64x64xf32>
    %68 = tpu.matmul %65, %67, %cst_38 {dimension_numbers = #tpu.dot_dimension_numbers<[1], [0], [0], [1], [0, 0, 1, 1], [], []>} : vector<64x64xf32>, vector<64x64xf32>, vector<64x64xf32> -> vector<64x64xf32>
    %cst_39 = arith.constant dense<0xFF800000> : vector<64xf32>
    %69 = vector.multi_reduction <maximumf>, %68, %cst_39 [0] : vector<64x64xf32> to vector<64xf32>
    %70 = vector.shape_cast %69 : vector<64xf32> to vector<1x64xf32>
    %71 = vector.broadcast %70 : vector<1x64xf32> to vector<64x64xf32>
    %72 = arith.subf %68, %71 : vector<64x64xf32>
    %73 = math.exp %72 : vector<64x64xf32>
    %cst_40 = arith.constant dense<0.000000e+00> : vector<64xf32>
    %74 = vector.multi_reduction <add>, %73, %cst_40 [0] : vector<64x64xf32> to vector<64xf32>
    %75 = vector.shape_cast %74 : vector<64xf32> to vector<1x64xf32>
    %76 = tpu.reciprocal %75 {approx = true} : vector<1x64xf32> -> vector<1x64xf32>
    %77 = vector.broadcast %76 : vector<1x64xf32> to vector<64x64xf32>
    %78 = arith.mulf %73, %77 : vector<64x64xf32>
    %cst_41 = arith.constant dense<0.000000e+00> : vector<8x64xf32>
    %79 = tpu.matmul %62, %78, %cst_41 {dimension_numbers = #tpu.dot_dimension_numbers<[1], [0], [0], [1], [0, 0, 1, 1], [], []>} : vector<8x64xf32>, vector<64x64xf32>, vector<8x64xf32> -> vector<8x64xf32>
    %80 = vector.broadcast %47 : f32 to vector<8x64xf32>
    %81 = arith.mulf %80, %79 : vector<8x64xf32>
    %82 = arith.addf %81, %54 : vector<8x64xf32>
    %83 = vector.extract_strided_slice %82 {offsets = [0, 0], sizes = [1, 64], strides = [1, 1]} : vector<8x64xf32> to vector<1x64xf32>
    %c0_42 = arith.constant 0 : index
    %c0_43 = arith.constant 0 : index
    %84 = vector.load %arg11[%c0_42, %c0_43] : memref<2x512xf32, #tpu.memory_space<vmem>>, vector<1x64xf32>
    tpu.vector_store %arg11[%c0_42, %c0_43], %83 {strides = array<i32>} : memref<2x512xf32, #tpu.memory_space<vmem>>, vector<1x64xf32>,
    %85 = vector.extract_strided_slice %82 {offsets = [1, 0], sizes = [1, 64], strides = [1, 1]} : vector<8x64xf32> to vector<1x64xf32>
    %c0_44 = arith.constant 0 : index
    %c64 = arith.constant 64 : index
    %86 = vector.load %arg11[%c0_44, %c64] : memref<2x512xf32, #tpu.memory_space<vmem>>, vector<1x64xf32>
    tpu.vector_store %arg11[%c0_44, %c64], %85 {strides = array<i32>} : memref<2x512xf32, #tpu.memory_space<vmem>>, vector<1x64xf32>,
    %87 = vector.extract_strided_slice %82 {offsets = [2, 0], sizes = [1, 64], strides = [1, 1]} : vector<8x64xf32> to vector<1x64xf32>
    %c0_45 = arith.constant 0 : index
    %c128 = arith.constant 128 : index
    %88 = vector.load %arg11[%c0_45, %c128] : memref<2x512xf32, #tpu.memory_space<vmem>>, vector<1x64xf32>
    tpu.vector_store %arg11[%c0_45, %c128], %87 {strides = array<i32>} : memref<2x512xf32, #tpu.memory_space<vmem>>, vector<1x64xf32>,
    %89 = vector.extract_strided_slice %82 {offsets = [3, 0], sizes = [1, 64], strides = [1, 1]} : vector<8x64xf32> to vector<1x64xf32>
    %c0_46 = arith.constant 0 : index
    %c192 = arith.constant 192 : index
    %90 = vector.load %arg11[%c0_46, %c192] : memref<2x512xf32, #tpu.memory_space<vmem>>, vector<1x64xf32>
    tpu.vector_store %arg11[%c0_46, %c192], %89 {strides = array<i32>} : memref<2x512xf32, #tpu.memory_space<vmem>>, vector<1x64xf32>,
    %91 = vector.extract_strided_slice %82 {offsets = [4, 0], sizes = [1, 64], strides = [1, 1]} : vector<8x64xf32> to vector<1x64xf32>
    %c0_47 = arith.constant 0 : index
    %c256 = arith.constant 256 : index
    %92 = vector.load %arg11[%c0_47, %c256] : memref<2x512xf32, #tpu.memory_space<vmem>>, vector<1x64xf32>
    tpu.vector_store %arg11[%c0_47, %c256], %91 {strides = array<i32>} : memref<2x512xf32, #tpu.memory_space<vmem>>, vector<1x64xf32>,
    %93 = vector.extract_strided_slice %82 {offsets = [5, 0], sizes = [1, 64], strides = [1, 1]} : vector<8x64xf32> to vector<1x64xf32>
    %c0_48 = arith.constant 0 : index
    %c320 = arith.constant 320 : index
    %94 = vector.load %arg11[%c0_48, %c320] : memref<2x512xf32, #tpu.memory_space<vmem>>, vector<1x64xf32>
    tpu.vector_store %arg11[%c0_48, %c320], %93 {strides = array<i32>} : memref<2x512xf32, #tpu.memory_space<vmem>>, vector<1x64xf32>,
    %95 = vector.extract_strided_slice %82 {offsets = [6, 0], sizes = [1, 64], strides = [1, 1]} : vector<8x64xf32> to vector<1x64xf32>
    %c0_49 = arith.constant 0 : index
    %c384 = arith.constant 384 : index
    %96 = vector.load %arg11[%c0_49, %c384] : memref<2x512xf32, #tpu.memory_space<vmem>>, vector<1x64xf32>
    tpu.vector_store %arg11[%c0_49, %c384], %95 {strides = array<i32>} : memref<2x512xf32, #tpu.memory_space<vmem>>, vector<1x64xf32>,
    %97 = vector.extract_strided_slice %82 {offsets = [7, 0], sizes = [1, 64], strides = [1, 1]} : vector<8x64xf32> to vector<1x64xf32>
    %c0_50 = arith.constant 0 : index
    %c448 = arith.constant 448 : index
    %98 = vector.load %arg11[%c0_50, %c448] : memref<2x512xf32, #tpu.memory_space<vmem>>, vector<1x64xf32>
    tpu.vector_store %arg11[%c0_50, %c448], %97 {strides = array<i32>} : memref<2x512xf32, #tpu.memory_space<vmem>>, vector<1x64xf32>,
    %c8_51 = arith.constant 8 : index
    %c0_52 = arith.constant 0 : index
    %99 = vector.load %arg10[%c8_51, %c0_52] : memref<16x64xf32, #tpu.memory_space<vmem>>, vector<8x64xf32>
    %c0_53 = arith.constant 0 : index
    %c0_54 = arith.constant 0 : index
    %100 = vector.load %arg5[%c0_53, %c0_54] : memref<10x8xf32, #tpu.memory_space<vmem>>, vector<10x8xf32>
    %cst_55 = arith.constant dense<0.000000e+00> : vector<10x64xf32>
    %101 = tpu.matmul %100, %99, %cst_55 {dimension_numbers = #tpu.dot_dimension_numbers<[1], [0], [0], [1], [0, 0, 1, 1], [], []>} : vector<10x8xf32>, vector<8x64xf32>, vector<10x64xf32> -> vector<10x64xf32>
    %c0_56 = arith.constant 0 : index
    %c0_57 = arith.constant 0 : index
    %102 = vector.load %arg6[%c0_56, %c0_57] : memref<10x1xf32, #tpu.memory_space<vmem>>, vector<10x1xf32>
    %103 = vector.broadcast %102 : vector<10x1xf32> to vector<10x64xf32>
    %104 = arith.addf %101, %103 : vector<10x64xf32>
    %105 = vector.extract_strided_slice %104 {offsets = [0, 0], sizes = [1, 64], strides = [1, 1]} : vector<10x64xf32> to vector<1x64xf32>
    %106 = vector.extract_strided_slice %104 {offsets = [1, 0], sizes = [1, 64], strides = [1, 1]} : vector<10x64xf32> to vector<1x64xf32>
    %107 = vector.extract_strided_slice %104 {offsets = [2, 0], sizes = [8, 64], strides = [1, 1]} : vector<10x64xf32> to vector<8x64xf32>
    %108 = vector.shape_cast %106 : vector<1x64xf32> to vector<1x64xf32>
    %109 = vector.broadcast %108 : vector<1x64xf32> to vector<64x64xf32>
    %110 = arith.mulf %109, %53 : vector<64x64xf32>
    %111 = vector.shape_cast %105 : vector<1x64xf32> to vector<1x64xf32>
    %112 = vector.broadcast %111 : vector<1x64xf32> to vector<64x64xf32>
    %cst_58 = arith.constant dense<0.000000e+00> : vector<64x64xf32>
    %113 = tpu.matmul %110, %112, %cst_58 {dimension_numbers = #tpu.dot_dimension_numbers<[1], [0], [0], [1], [0, 0, 1, 1], [], []>} : vector<64x64xf32>, vector<64x64xf32>, vector<64x64xf32> -> vector<64x64xf32>
    %cst_59 = arith.constant dense<0xFF800000> : vector<64xf32>
    %114 = vector.multi_reduction <maximumf>, %113, %cst_59 [0] : vector<64x64xf32> to vector<64xf32>
    %115 = vector.shape_cast %114 : vector<64xf32> to vector<1x64xf32>
    %116 = vector.broadcast %115 : vector<1x64xf32> to vector<64x64xf32>
    %117 = arith.subf %113, %116 : vector<64x64xf32>
    %118 = math.exp %117 : vector<64x64xf32>
    %cst_60 = arith.constant dense<0.000000e+00> : vector<64xf32>
    %119 = vector.multi_reduction <add>, %118, %cst_60 [0] : vector<64x64xf32> to vector<64xf32>
    %120 = vector.shape_cast %119 : vector<64xf32> to vector<1x64xf32>
    %121 = tpu.reciprocal %120 {approx = true} : vector<1x64xf32> -> vector<1x64xf32>
    %122 = vector.broadcast %121 : vector<1x64xf32> to vector<64x64xf32>
    %123 = arith.mulf %118, %122 : vector<64x64xf32>
    %cst_61 = arith.constant dense<0.000000e+00> : vector<8x64xf32>
    %124 = tpu.matmul %107, %123, %cst_61 {dimension_numbers = #tpu.dot_dimension_numbers<[1], [0], [0], [1], [0, 0, 1, 1], [], []>} : vector<8x64xf32>, vector<64x64xf32>, vector<8x64xf32> -> vector<8x64xf32>
    %125 = vector.broadcast %47 : f32 to vector<8x64xf32>
    %126 = arith.mulf %125, %124 : vector<8x64xf32>
    %127 = arith.addf %126, %99 : vector<8x64xf32>
    %128 = vector.extract_strided_slice %127 {offsets = [0, 0], sizes = [1, 64], strides = [1, 1]} : vector<8x64xf32> to vector<1x64xf32>
    %c1_62 = arith.constant 1 : index
    %c0_63 = arith.constant 0 : index
    %129 = vector.load %arg11[%c1_62, %c0_63] : memref<2x512xf32, #tpu.memory_space<vmem>>, vector<1x64xf32>
    tpu.vector_store %arg11[%c1_62, %c0_63], %128 {strides = array<i32>} : memref<2x512xf32, #tpu.memory_space<vmem>>, vector<1x64xf32>,
    %130 = vector.extract_strided_slice %127 {offsets = [1, 0], sizes = [1, 64], strides = [1, 1]} : vector<8x64xf32> to vector<1x64xf32>
    %c1_64 = arith.constant 1 : index
    %c64_65 = arith.constant 64 : index
    %131 = vector.load %arg11[%c1_64, %c64_65] : memref<2x512xf32, #tpu.memory_space<vmem>>, vector<1x64xf32>
    tpu.vector_store %arg11[%c1_64, %c64_65], %130 {strides = array<i32>} : memref<2x512xf32, #tpu.memory_space<vmem>>, vector<1x64xf32>,
    %132 = vector.extract_strided_slice %127 {offsets = [2, 0], sizes = [1, 64], strides = [1, 1]} : vector<8x64xf32> to vector<1x64xf32>
    %c1_66 = arith.constant 1 : index
    %c128_67 = arith.constant 128 : index
    %133 = vector.load %arg11[%c1_66, %c128_67] : memref<2x512xf32, #tpu.memory_space<vmem>>, vector<1x64xf32>
    tpu.vector_store %arg11[%c1_66, %c128_67], %132 {strides = array<i32>} : memref<2x512xf32, #tpu.memory_space<vmem>>, vector<1x64xf32>,
    %134 = vector.extract_strided_slice %127 {offsets = [3, 0], sizes = [1, 64], strides = [1, 1]} : vector<8x64xf32> to vector<1x64xf32>
    %c1_68 = arith.constant 1 : index
    %c192_69 = arith.constant 192 : index
    %135 = vector.load %arg11[%c1_68, %c192_69] : memref<2x512xf32, #tpu.memory_space<vmem>>, vector<1x64xf32>
    tpu.vector_store %arg11[%c1_68, %c192_69], %134 {strides = array<i32>} : memref<2x512xf32, #tpu.memory_space<vmem>>, vector<1x64xf32>,
    %136 = vector.extract_strided_slice %127 {offsets = [4, 0], sizes = [1, 64], strides = [1, 1]} : vector<8x64xf32> to vector<1x64xf32>
    %c1_70 = arith.constant 1 : index
    %c256_71 = arith.constant 256 : index
    %137 = vector.load %arg11[%c1_70, %c256_71] : memref<2x512xf32, #tpu.memory_space<vmem>>, vector<1x64xf32>
    tpu.vector_store %arg11[%c1_70, %c256_71], %136 {strides = array<i32>} : memref<2x512xf32, #tpu.memory_space<vmem>>, vector<1x64xf32>,
    %138 = vector.extract_strided_slice %127 {offsets = [5, 0], sizes = [1, 64], strides = [1, 1]} : vector<8x64xf32> to vector<1x64xf32>
    %c1_72 = arith.constant 1 : index
    %c320_73 = arith.constant 320 : index
    %139 = vector.load %arg11[%c1_72, %c320_73] : memref<2x512xf32, #tpu.memory_space<vmem>>, vector<1x64xf32>
    tpu.vector_store %arg11[%c1_72, %c320_73], %138 {strides = array<i32>} : memref<2x512xf32, #tpu.memory_space<vmem>>, vector<1x64xf32>,
    %140 = vector.extract_strided_slice %127 {offsets = [6, 0], sizes = [1, 64], strides = [1, 1]} : vector<8x64xf32> to vector<1x64xf32>
    %c1_74 = arith.constant 1 : index
    %c384_75 = arith.constant 384 : index
    %141 = vector.load %arg11[%c1_74, %c384_75] : memref<2x512xf32, #tpu.memory_space<vmem>>, vector<1x64xf32>
    tpu.vector_store %arg11[%c1_74, %c384_75], %140 {strides = array<i32>} : memref<2x512xf32, #tpu.memory_space<vmem>>, vector<1x64xf32>,
    %142 = vector.extract_strided_slice %127 {offsets = [7, 0], sizes = [1, 64], strides = [1, 1]} : vector<8x64xf32> to vector<1x64xf32>
    %c1_76 = arith.constant 1 : index
    %c448_77 = arith.constant 448 : index
    %143 = vector.load %arg11[%c1_76, %c448_77] : memref<2x512xf32, #tpu.memory_space<vmem>>, vector<1x64xf32>
    tpu.vector_store %arg11[%c1_76, %c448_77], %142 {strides = array<i32>} : memref<2x512xf32, #tpu.memory_space<vmem>>, vector<1x64xf32>,
    %c0_78 = arith.constant 0 : index
    %c0_79 = arith.constant 0 : index
    %144 = vector.load %arg11[%c0_78, %c0_79] : memref<2x512xf32, #tpu.memory_space<vmem>>, vector<2x512xf32>
    %c0_80 = arith.constant 0 : index
    %c0_81 = arith.constant 0 : index
    %145 = vector.load %arg7[%c0_80, %c0_81] : memref<512x256xf32, #tpu.memory_space<vmem>>, vector<512x256xf32>
    %cst_82 = arith.constant dense<0.000000e+00> : vector<2x256xf32>
    %146 = tpu.matmul %144, %145, %cst_82 {dimension_numbers = #tpu.dot_dimension_numbers<[1], [0], [0], [1], [0, 0, 1, 1], [], []>} : vector<2x512xf32>, vector<512x256xf32>, vector<2x256xf32> -> vector<2x256xf32>
    %147 = vector.broadcast %48 : f32 to vector<2x256xf32>
    %148 = arith.addf %146, %147 : vector<2x256xf32>
    %c0_83 = arith.constant 0 : index
    %c0_84 = arith.constant 0 : index
    %149 = vector.load %arg9[%c0_83, %c0_84] : memref<2x256xf32, #tpu.memory_space<vmem>>, vector<2x256xf32>
    tpu.vector_store %arg9[%c0_83, %c0_84], %148 {strides = array<i32>} : memref<2x256xf32, #tpu.memory_space<vmem>>, vector<2x256xf32>,
    return
  }
}

</mosaic_0001>

<bundles_post_ra>
// kernel: _hyper_image.1
= control target key start
LH: loop header
LB: loop body
LE: loop exit
PB: predicated region body
PF: predicated region fallthrough
CT: control target
= control target key end

     0   :  { %14 = vsyncpa [#allocation5], 0  ;;  %s2770_s0 = inlined_call_operand.vmem [shape: f32[2,8], index: 0, kind: input, shape index: {}]   ;;  %s2771_s1 = inlined_call_operand.vmem [shape: f32[8,256], index: 1, kind: input, shape index: {}]   ;;  %s2772_s2 = inlined_call_operand.vmem [shape: f32[1,256], index: 2, kind: input, shape index: {}]   ;;  %s2773_s3 = inlined_call_operand.hbm [shape: f32[256,512], index: 3, kind: input, shape index: {}]   ;;  %s2774_s4 = inlined_call_operand.vmem [shape: f32[1,512], index: 4, kind: input, shape index: {}]   ;;  %s2775_s5 = inlined_call_operand.vmem [shape: f32[10,8], index: 5, kind: input, shape index: {}]   ;;  %s2776_s6 = inlined_call_operand.vmem [shape: f32[10,1], index: 6, kind: input, shape index: {}]   ;;  %s2777_s7 = inlined_call_operand.hbm [shape: f32[512,256], index: 7, kind: input, shape index: {}]   ;;  %s2778_s8 = inlined_call_operand.vmem [shape: f32[2], index: 8, kind: input, shape index: {}]   ;;  %s2779_s9 = inlined_call_operand.hbm [shape: f32[2,256], index: 9, kind: output, shape index: {}]  }
   0x1   :  { %15 = vsyncpa [#allocation9], 0 }
   0x2   :  { %16 = vsyncpa [#allocation7], 0 }
   0x3   :  { %17 = vsyncpa [#allocation6], 0  ;;  %s2404_s30 = smov [#allocation4]   ;;  %s2318_s13 = scalar_lea.hbm %s2773_s3, 16384 }
   0x4   :  { %s29_s10 = sshll.u32 %s2404_s30, 4  ;;  %p2319_p0 = scmp.ne.s32.totalorder %s2773_s3, %s2318_s13  ;;  %s30_s10 = int_to_ptr.vmem [resolvable:$true] %s29_s10 }
   0x5   :  { %p2322_p1 = scmp.lt.u32.totalorder %s2318_s13, %s2773_s3 }
   0x7   :  { %p2324_p2 = pnand %p2322_p1, %p2319_p0 }
   0x9   :  { %2327 = shalt.err (!%p2324_p2)
}
   0xa   :  { %s2328_s18 = scalar_lea.vmem %s30_s10, 16384  ;;  %p2333_p4 = scmp.lt.s32.totalorder %s30_s10, %s30_s10 }
   0xb   :  { %p2329_p3 = scmp.ne.s32.totalorder %s30_s10, %s2328_s18  ;;  %p2334_p5 = scmp.lt.s32.totalorder %s2328_s18, %s2328_s18 }
   0xd   :  { %p2335_p6 = por %p2334_p5, %p2333_p4 }
   0xf   :  { %p2336_p7 = pnand %p2335_p6, %p2329_p3 }
  0x11   :  { %2339 = shalt.err (!%p2336_p7)
}
  0x12   :  { %s2405_s19 = smov 512   ;;  %s2406_s20 = smov 32  }
  0x13   :  { %35 = dma.hbm_to_vmem [thread:$0]  %s2773_s3, 16384, %s30_s10, [#allocation5], %s2405_s19, %s2405_s19, %s2406_s20  }
  0x14   :  { %s2407_s23 = smov [#allocation8]   ;;  %s2340_s27 = scalar_lea.hbm %s2777_s7, 16384 }
  0x15   :  { %s47_s24 = sshll.u32 %s2407_s23, 4  ;;  %p2341_p8 = scmp.ne.s32.totalorder %s2777_s7, %s2340_s27  ;;  %s48_s24 = int_to_ptr.vmem [resolvable:$true] %s47_s24 }
  0x16   :  { %p2344_p9 = scmp.lt.u32.totalorder %s2340_s27, %s2777_s7 }
  0x18   :  { %p2346_p10 = pnand %p2344_p9, %p2341_p8 }
  0x1a   :  { %2349 = shalt.err (!%p2346_p10)
}
  0x1b   :  { %s2350_s12 = scalar_lea.vmem %s48_s24, 16384  ;;  %p2355_p12 = scmp.lt.s32.totalorder %s48_s24, %s48_s24 }
  0x1c   :  { %p2351_p11 = scmp.ne.s32.totalorder %s48_s24, %s2350_s12  ;;  %p2356_p13 = scmp.lt.s32.totalorder %s2350_s12, %s2350_s12 }
  0x1e   :  { %p2357_p0 = por %p2356_p13, %p2355_p12 }
  0x20   :  { %p2358_p1 = pnand %p2357_p0, %p2351_p11 }
  0x22   :  { %2361 = shalt.err (!%p2358_p1)
}
  0x23   :  { %s2408_s3 = smov 256   ;;  %s2409_s10 = smov 16  }
  0x24   :  { %53 = dma.hbm_to_vmem [thread:$0]  %s2777_s7, 16384, %s48_s24, [#allocation9], %s2408_s3, %s2408_s3, %s2409_s10  }
  0x25   :  { %s60_s17 = sshll.u32 %s2778_s8, 4  ;;  %s61_s17 = int_to_ptr.vmem [resolvable:$true] %s60_s17 }
  0x26   :  { %s2362_s18 = scalar_lea.vmem %s61_s17, 16  ;;  %p2367_p3 = scmp.lt.s32.totalorder %s61_s17, %s61_s17 }
  0x27   :  { %p2363_p2 = scmp.ne.s32.totalorder %s61_s17, %s2362_s18  ;;  %p2368_p4 = scmp.lt.s32.totalorder %s2362_s18, %s2362_s18 }
  0x29   :  { %p2369_p5 = por %p2368_p4, %p2367_p3 }
  0x2b   :  { %p2370_p6 = pnand %p2369_p5, %p2363_p2 }
  0x2d   :  { %2373 = shalt.err (!%p2370_p6)
}
  0x2e   :  { %s2410_s19 = smov [#allocation10]  }
  0x2f   :  { %63 = dma.vmem_to_smem %s61_s17, 16, %s2410_s19, [#allocation7]  }
  0x30   :  { %2396 = dma.done.wait [#allocation5], 16384  }
  0x31   :  { %2397 = vsyncadd [#allocation5], 4294950912 }
  0x32   :  { %2398 = dma.done.wait [#allocation9], 16384  }
  0x33   :  { %2399 = vsyncadd [#allocation9], 4294950912 }
  0x34   :  { %2400 = dma.done.wait [#allocation7], 16  }
  0x35   :  { %2401 = vsyncadd [#allocation7], 4294967280 }
  0x36   :  { %73 = sfence }
  0x37   :  { %v76_v0 = vld [vmem:[%s2771_s1 + $0x8] sm:$0xff]  ;;  %v75_v1 = vld [vmem:[%s2771_s1] sm:$0xff]  ;;  %vm89_vm0 = vcmask 64512   ;;  %v2411_v3 = vmov 0.0   ;;  %v166_v6 = vld [vmem:[#allocation4] sm:$0xff]  ;;  %vm462_vm1 = vcmask 516096  }
  0x38   :  { %v74_v2 = vld [vmem:[%s2770_s0] sm:$0x3]  ;;  %93 = vmatprep.subr.mxu0 %v76_v0  ;;  %157 = vmatprep.mubr.f32.mxu0 %v2411_v3  ;;  %v170_v8 = vld [vmem:[#allocation4 + $0x20] sm:$0xff]  ;;  %vm487_vm2 = vcmask 517121   ;;  %s2412_s25 = smov 64   ;;  %vm852_vm4 = vcmask 1045504  }
  0x39   :  { %v167_v4 = vld [vmem:[#allocation4 + $0x8] sm:$0xff]  ;;  %94 = vmatpush1.msra.mxu0 %v75_v1  ;;  %v1951_v11 = vpack.c.bf16 %v170_v8, %v166_v6  ;;  %v174_v13 = vld [vmem:[#allocation4 + $0x40] sm:$0xff]  ;;  %vm645_vm5 = vcmask 523264   ;;  %vm2415_vm13 = vmmov 0   ;;  %s2669_s14 = sld [smem:[#allocation10]]  ;;  %vm945_vm14 = vcmask 1040896  }
  0x3a   :  { %v171_v5 = vld [vmem:[#allocation4 + $0x28] sm:$0xff]  ;;  %1748 = vmatmul.mubr.msk.f32.vlgmr.msra.gmra.mrb[0].mxu0 %vm89_vm0, %v74_v2  ;;  %v178_v14 = vld [vmem:[#allocation4 + $0x60] sm:$0xff]  ;;  %s2417_s15 = smov [#allocation11]  }
  0x3b   :  { %v1949_v7 = vpack.c.bf16 %v171_v5, %v167_v4  ;;  %v175_v9 = vld [vmem:[#allocation4 + $0x48] sm:$0xff]  ;;  %v1955_v17 = vpack.c.bf16 %v178_v14, %v174_v13  ;;  %v182_v19 = vld [vmem:[#allocation4 + $0x80] sm:$0xff]  ;;  %s1737_s16 = sshll.u32 %s2417_s15, 4  ;;  %s1738_s16 = int_to_ptr.vmem [resolvable:$true] %s1737_s16 }
  0x3c   :  { %v179_v10 = vld [vmem:[#allocation4 + $0x68] sm:$0xff]  ;;  %v186_v20 = vld [vmem:[#allocation4 + $0xa0] sm:$0xff]  ;;  %s2374_s17 = scalar_lea.vmem %s1738_s16, 64  ;;  %p2379_p8 = scmp.lt.s32.totalorder %s1738_s16, %s1738_s16 }
  0x3d   :  { %v1953_v12 = vpack.c.bf16 %v179_v10, %v175_v9  ;;  %v183_v15 = vld [vmem:[#allocation4 + $0x88] sm:$0xff]  ;;  %1950 = vmatprep.subr.bf16.mxu1 %v1949_v7  ;;  %v1959_v23 = vpack.c.bf16 %v186_v20, %v182_v19  ;;  %v190_v25 = vld [vmem:[#allocation4 + $0xc0] sm:$0xff]  ;;  %p2375_p7 = scmp.ne.s32.totalorder %s1738_s16, %s2374_s17  ;;  %p2380_p9 = scmp.lt.s32.totalorder %s2374_s17, %s2374_s17 }
  0x3e   :  { %v187_v16 = vld [vmem:[#allocation4 + $0xa8] sm:$0xff]  ;;  %1952 = vmatpush1.bf16.msra.mxu1 %v1951_v11  ;;  %v194_v26 = vld [vmem:[#allocation4 + $0xe0] sm:$0xff] }
  0x3f   :  { %1954 = vmatprep.subr.bf16.mxu1 %v1953_v12  ;;  %v1957_v18 = vpack.c.bf16 %v187_v16, %v183_v15  ;;  %v191_v21 = vld [vmem:[#allocation4 + $0xc8] sm:$0xff]  ;;  %v1963_v29 = vpack.c.bf16 %v194_v26, %v190_v25  ;;  %v198_v31 = vld [vmem:[#allocation4 + $0x100] sm:$0xff]  ;;  %p2381_p10 = por %p2380_p9, %p2379_p8 }
  0x40   :  { %v195_v22 = vld [vmem:[#allocation4 + $0xe8] sm:$0xff]  ;;  %v202_v32 = vld [vmem:[#allocation4 + $0x120] sm:$0xff] }
  0x41   :  { %v1961_v24 = vpack.c.bf16 %v195_v22, %v191_v21  ;;  %v199_v27 = vld [vmem:[#allocation4 + $0x108] sm:$0xff]  ;;  %v1967_v35 = vpack.c.bf16 %v202_v32, %v198_v31  ;;  %v206_v37 = vld [vmem:[#allocation4 + $0x140] sm:$0xff]  ;;  %p2382_p11 = pnand %p2381_p10, %p2375_p7 }
  0x42   :  { %1956 = vmatpush1.bf16.msra.mxu1 %v1955_v17  ;;  %v203_v28 = vld [vmem:[#allocation4 + $0x128] sm:$0xff]  ;;  %v210_v38 = vld [vmem:[#allocation4 + $0x160] sm:$0xff] }
  0x43   :  { %1958 = vmatprep.subr.bf16.mxu1 %v1957_v18  ;;  %v1965_v30 = vpack.c.bf16 %v203_v28, %v199_v27  ;;  %v207_v33 = vld [vmem:[#allocation4 + $0x148] sm:$0xff]  ;;  %v1971_v41 = vpack.c.bf16 %v210_v38, %v206_v37  ;;  %v214_v43 = vld [vmem:[#allocation4 + $0x180] sm:$0xff]  ;;  %v169_v37 = vld [vmem:[#allocation4 + $0x18] sm:$0xff] }
  0x44   :  { %v211_v34 = vld [vmem:[#allocation4 + $0x168] sm:$0xff]  ;;  %v218_v44 = vld [vmem:[#allocation4 + $0x1a0] sm:$0xff]  ;;  %v173_v38 = vld [vmem:[#allocation4 + $0x38] sm:$0xff] }
  0x45   :  { %v1969_v36 = vpack.c.bf16 %v211_v34, %v207_v33  ;;  %v215_v39 = vld [vmem:[#allocation4 + $0x188] sm:$0xff]  ;;  %v1975_v47 = vpack.c.bf16 %v218_v44, %v214_v43  ;;  %v222_v49 = vld [vmem:[#allocation4 + $0x1c0] sm:$0xff] }
  0x46   :  { %1960 = vmatpush1.bf16.msra.mxu1 %v1959_v23  ;;  %v219_v40 = vld [vmem:[#allocation4 + $0x1a8] sm:$0xff]  ;;  %v226_v50 = vld [vmem:[#allocation4 + $0x1e0] sm:$0xff] }
  0x47   :  { %1962 = vmatprep.subr.bf16.mxu1 %v1961_v24  ;;  %v1973_v42 = vpack.c.bf16 %v219_v40, %v215_v39  ;;  %v223_v45 = vld [vmem:[#allocation4 + $0x1c8] sm:$0xff]  ;;  %v1979_v53 = vpack.c.bf16 %v226_v50, %v222_v49  ;;  %v230_v55 = vld [vmem:[#allocation4 + $0x200] sm:$0xff]  ;;  %v2013_v39 = vpack.c.bf16 %v173_v38, %v169_v37  ;;  %v79_v40 = vlaneseq  ;;  %v168_v50 = vld [vmem:[#allocation4 + $0x10] sm:$0xff] }
  0x48   :  { %v227_v46 = vld [vmem:[#allocation4 + $0x1e8] sm:$0xff]  ;;  %v234_v56 = vld [vmem:[#allocation4 + $0x220] sm:$0xff]  ;;  %v232_v38 = vld [vmem:[#allocation4 + $0x210] sm:$0xff] }
  0x49   :  { %v1977_v48 = vpack.c.bf16 %v227_v46, %v223_v45  ;;  %v231_v51 = vld [vmem:[#allocation4 + $0x208] sm:$0xff]  ;;  %v1983_v59 = vpack.c.bf16 %v234_v56, %v230_v55  ;;  %v238_v61 = vld [vmem:[#allocation4 + $0x240] sm:$0xff] }
  0x4a   :  { %1964 = vmatpush1.bf16.msra.mxu1 %v1963_v29  ;;  %v235_v52 = vld [vmem:[#allocation4 + $0x228] sm:$0xff]  ;;  %v242_v62 = vld [vmem:[#allocation4 + $0x260] sm:$0xff] }
  0x4b   :  { %1966 = vmatprep.subr.bf16.mxu1 %v1965_v30  ;;  %v1981_v54 = vpack.c.bf16 %v235_v52, %v231_v51  ;;  %v239_v57 = vld [vmem:[#allocation4 + $0x248] sm:$0xff]  ;;  %v1987_v1 = vpack.c.bf16 %v242_v62, %v238_v61  ;;  %v246_v4 = vld [vmem:[#allocation4 + $0x280] sm:$0xff]  ;;  %v172_v51 = vld [vmem:[#allocation4 + $0x30] sm:$0xff] }
  0x4c   :  { %v243_v58 = vld [vmem:[#allocation4 + $0x268] sm:$0xff]  ;;  %v250_v5 = vld [vmem:[#allocation4 + $0x2a0] sm:$0xff]  ;;  %v2015_v56 = vpack.c.bf16 %v172_v51, %v168_v50  ;;  %v185_v61 = vld [vmem:[#allocation4 + $0x98] sm:$0xff] }
  0x4d   :  { %v1985_v60 = vpack.c.bf16 %v243_v58, %v239_v57  ;;  %v247_v63 = vld [vmem:[#allocation4 + $0x288] sm:$0xff]  ;;  %v1991_v8 = vpack.c.bf16 %v250_v5, %v246_v4  ;;  %v254_v10 = vld [vmem:[#allocation4 + $0x2c0] sm:$0xff]  ;;  %v189_v62 = vld [vmem:[#allocation4 + $0xb8] sm:$0xff] }
  0x4e   :  { %1968 = vmatpush1.bf16.msra.mxu1 %v1967_v35  ;;  %v251_v0 = vld [vmem:[#allocation4 + $0x2a8] sm:$0xff]  ;;  %v258_v11 = vld [vmem:[#allocation4 + $0x2e0] sm:$0xff]  ;;  %v193_v4 = vld [vmem:[#allocation4 + $0xd8] sm:$0xff] }
  0x4f   :  { %1970 = vmatprep.subr.bf16.mxu1 %v1969_v36  ;;  %v1989_v2 = vpack.c.bf16 %v251_v0, %v247_v63  ;;  %v255_v6 = vld [vmem:[#allocation4 + $0x2c8] sm:$0xff]  ;;  %v1995_v14 = vpack.c.bf16 %v258_v11, %v254_v10  ;;  %v262_v16 = vld [vmem:[#allocation4 + $0x300] sm:$0xff]  ;;  %v2021_v0 = vpack.c.bf16 %v189_v62, %v185_v61  ;;  %v197_v5 = vld [vmem:[#allocation4 + $0xf8] sm:$0xff] }
  0x50   :  { %v259_v7 = vld [vmem:[#allocation4 + $0x2e8] sm:$0xff]  ;;  %v266_v17 = vld [vmem:[#allocation4 + $0x320] sm:$0xff]  ;;  %v201_v10 = vld [vmem:[#allocation4 + $0x118] sm:$0xff] }
  0x51   :  { %v1993_v9 = vpack.c.bf16 %v259_v7, %v255_v6  ;;  %v263_v12 = vld [vmem:[#allocation4 + $0x308] sm:$0xff]  ;;  %v1999_v20 = vpack.c.bf16 %v266_v17, %v262_v16  ;;  %v270_v22 = vld [vmem:[#allocation4 + $0x340] sm:$0xff]  ;;  %v2025_v7 = vpack.c.bf16 %v197_v5, %v193_v4  ;;  %v205_v11 = vld [vmem:[#allocation4 + $0x138] sm:$0xff] }
  0x52   :  { %1972 = vmatpush1.bf16.msra.mxu1 %v1971_v41  ;;  %v267_v13 = vld [vmem:[#allocation4 + $0x328] sm:$0xff]  ;;  %v274_v23 = vld [vmem:[#allocation4 + $0x360] sm:$0xff]  ;;  %v2507_v41 = vshrl.u32 %v79_v40, 7  ;;  %v209_v16 = vld [vmem:[#allocation4 + $0x158] sm:$0xff] }
  0x53   :  { %1974 = vmatprep.subr.bf16.mxu1 %v1973_v42  ;;  %v1997_v15 = vpack.c.bf16 %v267_v13, %v263_v12  ;;  %v271_v18 = vld [vmem:[#allocation4 + $0x348] sm:$0xff]  ;;  %v2003_v26 = vpack.c.bf16 %v274_v23, %v270_v22  ;;  %v278_v28 = vld [vmem:[#allocation4 + $0x380] sm:$0xff]  ;;  %v2029_v13 = vpack.c.bf16 %v205_v11, %v201_v10  ;;  %v213_v17 = vld [vmem:[#allocation4 + $0x178] sm:$0xff] }
  0x54   :  { %v275_v19 = vld [vmem:[#allocation4 + $0x368] sm:$0xff]  ;;  %v282_v29 = vld [vmem:[#allocation4 + $0x3a0] sm:$0xff]  ;;  %v2510_v42 = vsub.s32 0, %v2507_v41  ;;  %v2516_v44 = vsub.s32 1, %v2507_v41  ;;  %v217_v22 = vld [vmem:[#allocation4 + $0x198] sm:$0xff] }
  0x55   :  { %v2001_v21 = vpack.c.bf16 %v275_v19, %v271_v18  ;;  %v279_v24 = vld [vmem:[#allocation4 + $0x388] sm:$0xff]  ;;  %v2007_v30 = vpack.c.bf16 %v282_v29, %v278_v28  ;;  %v286_v34 = vld [vmem:[#allocation4 + $0x3c0] sm:$0xff]  ;;  %v2033_v19 = vpack.c.bf16 %v213_v17, %v209_v16  ;;  %v221_v23 = vld [vmem:[#allocation4 + $0x1b8] sm:$0xff] }
  0x56   :  { %1976 = vmatpush1.bf16.msra.mxu1 %v1975_v47  ;;  %v283_v25 = vld [vmem:[#allocation4 + $0x3a8] sm:$0xff]  ;;  %v290_v35 = vld [vmem:[#allocation4 + $0x3e0] sm:$0xff]  ;;  %v225_v28 = vld [vmem:[#allocation4 + $0x1d8] sm:$0xff] }
  0x57   :  { %1978 = vmatprep.subr.bf16.mxu1 %v1977_v48  ;;  %v2005_v27 = vpack.c.bf16 %v283_v25, %v279_v24  ;;  %v287_v31 = vld [vmem:[#allocation4 + $0x3c8] sm:$0xff]  ;;  %v2011_v36 = vpack.c.bf16 %v290_v35, %v286_v34  ;;  %v2037_v25 = vpack.c.bf16 %v221_v23, %v217_v22  ;;  %v229_v29 = vld [vmem:[#allocation4 + $0x1f8] sm:$0xff]  ;;  %v244_v50 = vld [vmem:[#allocation4 + $0x270] sm:$0xff] }
  0x58   :  { %v291_v32 = vld [vmem:[#allocation4 + $0x3e8] sm:$0xff]  ;;  %v233_v34 = vld [vmem:[#allocation4 + $0x218] sm:$0xff]  ;;  %v256_v62 = vld [vmem:[#allocation4 + $0x2d0] sm:$0xff] }
  0x59   :  { %v2009_v33 = vpack.c.bf16 %v291_v32, %v287_v31  ;;  %v77_v43 = vld [vmem:[%s2772_s2] sm:$0x3]  ;;  %v2041_v31 = vpack.c.bf16 %v229_v29, %v225_v28  ;;  %v224_v32 = vld [vmem:[#allocation4 + $0x1d0] sm:$0xff]  ;;  %v237_v35 = vld [vmem:[#allocation4 + $0x238] sm:$0xff] }
  0x5a   :  { %1980 = vmatpush1.bf16.msra.mxu1 %v1979_v53  ;;  %v82_v45 = vrot.slane %v77_v43, %v2510_v42  ;;  %v86_v46 = vrot.slane %v77_v43, %v2516_v44  ;;  %v177_v53 = vld [vmem:[#allocation4 + $0x58] sm:$0xff]  ;;  %v2045_v37 = vpack.c.bf16 %v237_v35, %v233_v34  ;;  %v264_v5 = vld [vmem:[#allocation4 + $0x310] sm:$0xff] }
  0x5b   :  { %1982 = vmatprep.subr.bf16.mxu1 %v1981_v54  ;;  %v181_v54 = vld [vmem:[#allocation4 + $0x78] sm:$0xff]  ;;  %v272_v11 = vld [vmem:[#allocation4 + $0x350] sm:$0xff] }
  0x5c   :  { %v2017_v58 = vpack.c.bf16 %v181_v54, %v177_v53  ;;  %v241_v43 = vld [vmem:[#allocation4 + $0x258] sm:$0xff]  ;;  %v280_v17 = vld [vmem:[#allocation4 + $0x390] sm:$0xff] }
  0x5d   :  { %v249_v51 = vld [vmem:[#allocation4 + $0x298] sm:$0xff]  ;;  %v288_v23 = vld [vmem:[#allocation4 + $0x3d0] sm:$0xff] }
  0x5e   :  { %1984 = vmatpush1.bf16.msra.mxu1 %v1983_v59  ;;  %v176_v59 = vld [vmem:[#allocation4 + $0x50] sm:$0xff] }
  0x5f   :  { %1986 = vmatprep.subr.bf16.mxu1 %v1985_v60  ;;  %v180_v60 = vld [vmem:[#allocation4 + $0x70] sm:$0xff] }
  0x60   :  { %v2019_v63 = vpack.c.bf16 %v180_v60, %v176_v59  ;;  %v261_v59 = vld [vmem:[#allocation4 + $0x2f8] sm:$0xff] }
  0x62   :  { %1988 = vmatpush1.bf16.msra.mxu1 %v1987_v1  ;;  %v184_v1 = vld [vmem:[#allocation4 + $0x90] sm:$0xff] }
  0x63   :  { %1990 = vmatprep.subr.bf16.mxu1 %v1989_v2  ;;  %v188_v2 = vld [vmem:[#allocation4 + $0xb0] sm:$0xff] }
  0x64   :  { %v2023_v6 = vpack.c.bf16 %v188_v2, %v184_v1  ;;  %v269_v1 = vld [vmem:[#allocation4 + $0x338] sm:$0xff] }
  0x66   :  { %1992 = vmatpush1.bf16.msra.mxu1 %v1991_v8  ;;  %v192_v8 = vld [vmem:[#allocation4 + $0xd0] sm:$0xff] }
  0x67   :  { %1994 = vmatprep.subr.bf16.mxu1 %v1993_v9  ;;  %v196_v9 = vld [vmem:[#allocation4 + $0xf0] sm:$0xff] }
  0x68   :  { %v2027_v12 = vpack.c.bf16 %v196_v9, %v192_v8  ;;  %v277_v8 = vld [vmem:[#allocation4 + $0x378] sm:$0xff] }
  0x6a   :  { %1996 = vmatpush1.bf16.msra.mxu1 %v1995_v14  ;;  %v200_v14 = vld [vmem:[#allocation4 + $0x110] sm:$0xff] }
  0x6b   :  { %1998 = vmatprep.subr.bf16.mxu1 %v1997_v15  ;;  %v204_v15 = vld [vmem:[#allocation4 + $0x130] sm:$0xff] }
  0x6c   :  { %v2031_v18 = vpack.c.bf16 %v204_v15, %v200_v14  ;;  %v285_v14 = vld [vmem:[#allocation4 + $0x3b8] sm:$0xff] }
  0x6e   :  { %2000 = vmatpush1.bf16.msra.mxu1 %v1999_v20  ;;  %v208_v20 = vld [vmem:[#allocation4 + $0x150] sm:$0xff] }
  0x6f   :  { %2002 = vmatprep.subr.bf16.mxu1 %v2001_v21  ;;  %v212_v21 = vld [vmem:[#allocation4 + $0x170] sm:$0xff] }
  0x70   :  { %v2035_v24 = vpack.c.bf16 %v212_v21, %v208_v20  ;;  %v293_v20 = vld [vmem:[#allocation4 + $0x3f8] sm:$0xff] }
  0x72   :  { %2004 = vmatpush1.bf16.msra.mxu1 %v2003_v26  ;;  %v216_v26 = vld [vmem:[#allocation4 + $0x190] sm:$0xff] }
  0x73   :  { %2006 = vmatprep.subr.bf16.mxu1 %v2005_v27  ;;  %v220_v27 = vld [vmem:[#allocation4 + $0x1b0] sm:$0xff] }
  0x76   :  { %2008 = vmatpush1.bf16.msra.mxu1 %v2007_v30  ;;  %v2039_v30 = vpack.c.bf16 %v220_v27, %v216_v26  ;;  %v294_v26 = vld [vmem:[%s2774_s4] sm:$0xf] }
  0x77   :  { %2010 = vmatprep.subr.bf16.mxu1 %v2009_v33  ;;  %v228_v33 = vld [vmem:[#allocation4 + $0x1f0] sm:$0xff]  ;;  %v299_v27 = vrot.slane %v294_v26, %v2510_v42  ;;  %v303_v28 = vrot.slane %v294_v26, %v2516_v44 }
  0x7a   :  { %2012 = vmatpush1.bf16.msra.mxu1 %v2011_v36  ;;  %v2043_v36 = vpack.c.bf16 %v228_v33, %v224_v32 }
  0x7b   :  { %2014 = vmatprep.subr.bf16.mxu1 %v2013_v39  ;;  %v236_v39 = vld [vmem:[#allocation4 + $0x230] sm:$0xff] }
 0x10d   :  { %v159_v47 = vpop.f32.mrb[0].mxu0 }
 0x10e   :  { %v2520_v48 = vadd.f32 %v159_v47, %v82_v45  ;;  %v161_v49 = vpop.f32.mrb[1].mxu0  ;;  %v245_v45 = vld [vmem:[#allocation4 + $0x278] sm:$0xff] }
 0x10f   :  { %v162_v52 = vadd.f32 %v161_v49, %v86_v46  ;;  %v2047_v46 = vpack.c.bf16 %v236_v39, %v232_v38  ;;  %v2049_v47 = vpack.c.bf16 %v245_v45, %v241_v43  ;;  %v240_v49 = vld [vmem:[#allocation4 + $0x250] sm:$0xff] }
 0x110   :  { %v164_v57 = vmax.f32 %v2520_v48, 0.0  ;;  %v2051_v53 = vpack.c.bf16 %v244_v50, %v240_v49  ;;  %v306_v48 = vsub.s32 2, %v2507_v41  ;;  %v536_v49 = vld [vmem:[%s2776_s6] sm:$0xff]  ;;  %v2413_v50 = vmov 0  }
 0x111   :  { %v165_v55 = vmax.f32 %v162_v52, 0.0  ;;  %v253_v52 = vld [vmem:[#allocation4 + $0x2b8] sm:$0xff]  ;;  %2279 = vset.pattern.permute.xlu0 %v2413_v50  ;;  %2280 = vset.pattern.permute.xlu1 %v2413_v50 }
 0x112   :  { %v2053_v54 = vpack.c.bf16 %v253_v52, %v249_v51  ;;  %v307_v35 = vrot.slane %v294_v26, %v306_v48  ;;  %v985_v51 = vld [vmem:[%s2776_s6 + $0x8] sm:$0x3] }
 0x113   :  { %380 = vmatprep.mubr.f32.mxu1 %v165_v55  ;;  %v537_v52 = vld [vmem:[%s2776_s6 + $0x8] sm:$0x3] }
 0x114   :  { %381 = vmatmul.mubr.f32.vlgmr.msra.gmra.mrb[0].mxu1 %v164_v57 }
 0x115   :  { %2016 = vmatpush1.bf16.msra.mxu1 %v2015_v56  ;;  %451 = vmatprep.mubr.f32.mxu1 %v165_v55  ;;  %v248_v55 = vld [vmem:[#allocation4 + $0x290] sm:$0xff] }
 0x116   :  { %2018 = vmatprep.subr.bf16.mxu1 %v2017_v58  ;;  %v252_v56 = vld [vmem:[#allocation4 + $0x2b0] sm:$0xff]  ;;  %v257_v58 = vld [vmem:[#allocation4 + $0x2d8] sm:$0xff] }
 0x117   :  { %v2055_v60 = vpack.c.bf16 %v252_v56, %v248_v55  ;;  %v2057_v61 = vpack.c.bf16 %v261_v59, %v257_v58  ;;  %v535_v59 = vld [vmem:[%s2775_s5 + $0x8] sm:$0x3] }
 0x119   :  { %2020 = vmatpush1.bf16.msra.mxu1 %v2019_v63  ;;  %v260_v63 = vld [vmem:[#allocation4 + $0x2f0] sm:$0xff] }
 0x11a   :  { %2022 = vmatprep.subr.bf16.mxu1 %v2021_v0  ;;  %v265_v0 = vld [vmem:[#allocation4 + $0x318] sm:$0xff]  ;;  %v2059_v2 = vpack.c.bf16 %v260_v63, %v256_v62 }
 0x11b   :  { %v2061_v4 = vpack.c.bf16 %v269_v1, %v265_v0 }
 0x11d   :  { %2024 = vmatpush1.bf16.msra.mxu1 %v2023_v6  ;;  %v268_v6 = vld [vmem:[#allocation4 + $0x330] sm:$0xff] }
 0x11e   :  { %2026 = vmatprep.subr.bf16.mxu1 %v2025_v7  ;;  %v273_v7 = vld [vmem:[#allocation4 + $0x358] sm:$0xff]  ;;  %v2063_v9 = vpack.c.bf16 %v268_v6, %v264_v5 }
 0x11f   :  { %v2065_v10 = vpack.c.bf16 %v277_v8, %v273_v7 }
 0x121   :  { %2028 = vmatpush1.bf16.msra.mxu1 %v2027_v12  ;;  %v276_v12 = vld [vmem:[#allocation4 + $0x370] sm:$0xff] }
 0x122   :  { %2030 = vmatprep.subr.bf16.mxu1 %v2029_v13  ;;  %v281_v13 = vld [vmem:[#allocation4 + $0x398] sm:$0xff]  ;;  %v2067_v15 = vpack.c.bf16 %v276_v12, %v272_v11  ;;  %v500_v11 = vadd.s32 8, %v2507_v41  ;;  %v501_v12 = vadd.s32 16, %v2507_v41 }
 0x123   :  { %v2069_v16 = vpack.c.bf16 %v285_v14, %v281_v13  ;;  %v502_v13 = vadd.s32 24, %v2507_v41  ;;  %v503_v14 = vadd.s32 32, %v2507_v41 }
 0x125   :  { %2032 = vmatpush1.bf16.msra.mxu1 %v2031_v18  ;;  %v284_v18 = vld [vmem:[#allocation4 + $0x3b0] sm:$0xff] }
 0x126   :  { %2034 = vmatprep.subr.bf16.mxu1 %v2033_v19  ;;  %v289_v19 = vld [vmem:[#allocation4 + $0x3d8] sm:$0xff]  ;;  %v2071_v21 = vpack.c.bf16 %v284_v18, %v280_v17  ;;  %v504_v17 = vadd.s32 40, %v2507_v41  ;;  %v505_v18 = vadd.s32 48, %v2507_v41 }
 0x127   :  { %v2073_v22 = vpack.c.bf16 %v293_v20, %v289_v19 }
 0x129   :  { %2036 = vmatpush1.bf16.msra.mxu1 %v2035_v24  ;;  %v292_v24 = vld [vmem:[#allocation4 + $0x3f0] sm:$0xff] }
 0x12a   :  { %2038 = vmatprep.subr.bf16.mxu1 %v2037_v25  ;;  %v2075_v25 = vpack.c.bf16 %v292_v24, %v288_v23  ;;  %v506_v23 = vadd.s32 56, %v2507_v41 }
 0x12d   :  { %2040 = vmatpush1.bf16.msra.mxu1 %v2039_v30 }
 0x12e   :  { %2042 = vmatprep.subr.bf16.mxu1 %v2041_v31 }
 0x131   :  { %2044 = vmatpush1.bf16.msra.mxu1 %v2043_v36 }
 0x132   :  { %2046 = vmatprep.subr.bf16.mxu1 %v2045_v37 }
 0x135   :  { %2048 = vmatpush1.bf16.msra.mxu1 %v2047_v46 }
 0x136   :  { %2050 = vmatprep.subr.bf16.mxu1 %v2049_v47  ;;  %v2543_v47 = vld [vmem:[%s2775_s5] sm:$0xff] }
 0x137   :  { %1847 = vmatprep.mubr.msk.f32.mxu0 %vm89_vm0, %v2543_v47 }
 0x139   :  { %2052 = vmatpush1.bf16.msra.mxu1 %v2051_v53 }
 0x13a   :  { %2054 = vmatprep.subr.bf16.mxu1 %v2053_v54 }
 0x13d   :  { %2056 = vmatpush1.bf16.msra.mxu1 %v2055_v60  ;;  %v508_v60 = vand.u32 127, %v79_v40 }
 0x13e   :  { %2058 = vmatprep.subr.bf16.mxu1 %v2057_v61 }
 0x13f   :  { %vm509_vm3 = vcmp.eq.s32.totalorder %v2507_v41, %v508_v60  ;;  %vm510_vm6 = vcmp.eq.s32.totalorder %v500_v11, %v508_v60  ;;  %vm511_vm7 = vcmp.eq.s32.totalorder %v501_v12, %v508_v60  ;;  %vm512_vm8 = vcmp.eq.s32.totalorder %v502_v13, %v508_v60 }
 0x140   :  { %v2581_v5 = vsel %vm509_vm3, 1.0, %v2411_v3  ;;  %vm513_vm9 = vcmp.eq.s32.totalorder %v503_v14, %v508_v60  ;;  %vm514_vm10 = vcmp.eq.s32.totalorder %v504_v17, %v508_v60  ;;  %vm515_vm11 = vcmp.eq.s32.totalorder %v505_v18, %v508_v60 }
 0x141   :  { %2060 = vmatpush1.bf16.msra.mxu1 %v2059_v2  ;;  %vm516_vm12 = vcmp.eq.s32.totalorder %v506_v23, %v508_v60 }
 0x142   :  { %2062 = vmatprep.subr.bf16.mxu1 %v2061_v4 }
 0x145   :  { %2064 = vmatpush1.bf16.msra.mxu1 %v2063_v9 }
 0x146   :  { %2066 = vmatprep.subr.bf16.mxu1 %v2065_v10 }
 0x149   :  { %2068 = vmatpush1.bf16.msra.mxu1 %v2067_v15  ;;  %v2595_v15 = vsel %vm510_vm6, 1.0, %v2411_v3 }
 0x14a   :  { %2070 = vmatprep.subr.bf16.mxu1 %v2069_v16  ;;  %v2598_v16 = vsel %vm511_vm7, 1.0, %v2411_v3 }
 0x14d   :  { %2072 = vmatpush1.bf16.msra.mxu1 %v2071_v21  ;;  %v2605_v21 = vsel %vm512_vm8, 1.0, %v2411_v3 }
 0x14e   :  { %2074 = vmatprep.subr.bf16.mxu1 %v2073_v22  ;;  %v2609_v22 = vsel %vm513_vm9, 1.0, %v2411_v3 }
 0x151   :  { %2076 = vmatpush1.bf16.msra.mxu1 %v2075_v25 }
 0x154   :  { %452 = vmatmul.mubr.f32.vlgmr.msra.gmra.mrb[2].mxu1 %v164_v57  ;;  %v310_v57 = vsub.s32 3, %v2507_v41 }
 0x155   :  { %1894 = vmatprep.mubr.msk.f32.mxu1 %vm2415_vm13, %v2411_v3 }
 0x156   :  { %v311_v36 = vrot.slane %v294_v26, %v310_v57  ;;  %v2616_v26 = vsel %vm514_vm10, 1.0, %v2411_v3 }
 0x1e7   :  { %v382_v29 = vpop.f32.mrb[0].mxu1 }
 0x1e8   :  { %v383_v30 = vadd.f32 %v382_v29, %v299_v27  ;;  %v384_v31 = vpop.f32.mrb[1].mxu1  ;;  %v2620_v27 = vsel %vm515_vm11, 1.0, %v2411_v3 }
 0x1e9   :  { %v385_v32 = vadd.f32 %v384_v31, %v303_v28 }
 0x1ea   :  { %v458_v33 = vmax.f32 %v383_v30, 0.0  ;;  %v2626_v30 = vsel %vm516_vm12, 1.0, %v2411_v3 }
 0x1eb   :  { %v459_v34 = vmax.f32 %v385_v32, 0.0  ;;  %v2414_v32 = vmov 0.0|0.0  }
 0x1ec   :  { %463 = vst.msk [vmem:[#allocation2] sm:$0x1] %vm462_vm1, %v458_v33  ;;  %465 = vrot.lane.b32.xlu0 %v458_v33, %s2412_s25  ;;  %2093 = vmatprep.subr.bf16.mxu1 %v2414_v32 }
 0x1ed   :  { %488 = vst.msk [vmem:[#allocation2 + $0x7] sm:$0x2] %vm487_vm2, %v458_v33  ;;  %490 = vst.msk [vmem:[#allocation2 + $0x9] sm:$0x2] %vm487_vm2, %v459_v34 }
 0x1ee   :  { %469 = vst.msk [vmem:[#allocation2 + $0x2] sm:$0x1] %vm462_vm1, %v459_v34 }
 0x1f0   :  { %471 = vrot.lane.b32.xlu0 %v459_v34, %s2412_s25 }
 0x1f4   :  { %540 = vperm.xlu0 %2279, %v536_v49  }
 0x1f8   :  { %993 = vperm.xlu0 %2279, %v985_v51  }
 0x227   :  { %v453_v37 = vpop.f32.mrb[2].mxu1 }
 0x228   :  { %v454_v38 = vadd.f32 %v453_v37, %v307_v35  ;;  %v455_v39 = vpop.f32.mrb[3].mxu1 }
 0x229   :  { %v456_v43 = vadd.f32 %v455_v39, %v311_v36 }
 0x22a   :  { %v460_v45 = vmax.f32 %v454_v38, 0.0 }
 0x22b   :  { %v461_v46 = vmax.f32 %v456_v43, 0.0 }
 0x22c   :  { %475 = vst.msk [vmem:[#allocation2 + $0x4] sm:$0x1] %vm462_vm1, %v460_v45  ;;  %477 = vrot.lane.b32.xlu1 %v460_v45, %s2412_s25 }
 0x22d   :  { %492 = vst.msk [vmem:[#allocation2 + $0xb] sm:$0x2] %vm487_vm2, %v460_v45  ;;  %494 = vst.msk [vmem:[#allocation2 + $0xd] sm:$0x2] %vm487_vm2, %v461_v46 }
 0x22e   :  { %481 = vst.msk [vmem:[#allocation2 + $0x6] sm:$0x1] %vm462_vm1, %v461_v46 }
 0x230   :  { %483 = vrot.lane.b32.xlu1 %v461_v46, %s2412_s25 }
 0x234   :  { %545 = vperm.xlu1 %2280, %v537_v52  }
 0x238   :  { %988 = vperm.xlu1 %2280, %v536_v49  }
 0x25e   :  { %v466_v53 = vpop.permute.xlu0 %465 }
 0x25f   :  { %468 = vst.msk [vmem:[#allocation2 + $0x1] sm:$0x1] %vm462_vm1, %v466_v53 }
 0x260   :  { %489 = vst.msk [vmem:[#allocation2 + $0x8] sm:$0x2] %vm487_vm2, %v466_v53 }
 0x262   :  { %v472_v54 = vpop.permute.xlu0 %471 }
 0x263   :  { %474 = vst.msk [vmem:[#allocation2 + $0x3] sm:$0x1] %vm462_vm1, %v472_v54 }
 0x264   :  { %491 = vst.msk [vmem:[#allocation2 + $0xa] sm:$0x2] %vm487_vm2, %v472_v54 }
 0x273   :  { %v541_v63 = vpop.permute.xlu0 %540 }
 0x29e   :  { %v478_v55 = vpop.permute.xlu1 %477 }
 0x29f   :  { %480 = vst.msk [vmem:[#allocation2 + $0x5] sm:$0x1] %vm462_vm1, %v478_v55 }
 0x2a0   :  { %493 = vst.msk [vmem:[#allocation2 + $0xc] sm:$0x2] %vm487_vm2, %v478_v55 }
 0x2a2   :  { %v484_v56 = vpop.permute.xlu1 %483 }
 0x2a3   :  { %486 = vst.msk [vmem:[#allocation2 + $0x7] sm:$0x1] %vm462_vm1, %v484_v56 }
 0x2a4   :  { %495 = vst.msk [vmem:[#allocation2 + $0xe] sm:$0x2] %vm487_vm2, %v484_v56 }
 0x2aa   :  { %v2570_v58 = vld [vmem:[#allocation2] sm:$0xff] }
 0x2ab   :  { %1845 = vmatprep.subr.mxu0 %v2570_v58 }
 0x2ac   :  { %1846 = vmatpush3.msra.mxu0 %v2570_v58 }
 0x2ad   :  { %1848 = vmatmul.mubr.msk.f32.vlgmr.msra.gmra.mrb[2].mxu0 %vm89_vm0, %v535_v59 }
 0x2b3   :  { %v546_v61 = vpop.permute.xlu1 %545 }
 0x380   :  { %v1849_v62 = vpop.f32.mrb[2].mxu0 }
 0x381   :  { %v620_v0 = vpop.f32.mrb[3].mxu0  ;;  %v626_v1 = vadd.f32 %v1849_v62, %v546_v61 }
 0x382   :  { %v621_v2 = vadd.f32 %v620_v0, %v541_v63 }
 0x383   :  { %v854_v4 = vrot.slane %v626_v1, 2 }
 0x384   :  { %v632_v6 = vrot.slane %v621_v2, %v2516_v44  ;;  %v644_v7 = vrot.slane %v621_v2, %v2510_v42  ;;  %v853_v8 = vrot.slane %v621_v2, 2 }
 0x386   :  { %v2077_v40 = vpack.c.bf16 %v644_v7, %v644_v7  ;;  %v2586_v9 = vsel %vm852_vm4, %v853_v8, %v854_v4  ;;  %v633_v10 = vmul.f32 %v2581_v5, %v632_v6  ;;  %v634_v19 = vmul.f32 %v2595_v15, %v632_v6 }
 0x387   :  { %v635_v20 = vmul.f32 %v2598_v16, %v632_v6  ;;  %v636_v24 = vmul.f32 %v2605_v21, %v632_v6  ;;  %v637_v25 = vmul.f32 %v2609_v22, %v632_v6  ;;  %v638_v28 = vmul.f32 %v2616_v26, %v632_v6 }
 0x388   :  { %2078 = vmatprep.subr.bf16.mxu0 %v2077_v40  ;;  %1866 = vmatprep.mubr.msk.f32.mxu0 %vm645_vm5, %v633_v10  ;;  %v639_v29 = vmul.f32 %v2620_v27, %v632_v6  ;;  %v640_v31 = vmul.f32 %v2626_v30, %v632_v6 }
 0x389   :  { %2080 = vmatpush3.bf16.msra.mxu0 %v2077_v40 }
 0x38a   :  { %2082 = vmatprep.subr.bf16.mxu0 %v2077_v40 }
 0x38d   :  { %2084 = vmatpush3.bf16.msra.mxu0 %v2077_v40 }
 0x38e   :  { %2086 = vmatprep.subr.bf16.mxu0 %v2077_v40 }
 0x391   :  { %2088 = vmatpush3.bf16.msra.mxu0 %v2077_v40 }
 0x392   :  { %2090 = vmatprep.subr.bf16.mxu0 %v2077_v40 }
 0x395   :  { %2092 = vmatpush3.bf16.msra.mxu0 %v2077_v40 }
 0x398   :  { %1867 = vmatmul.mubr.msk.f32.vlgmr.msra.gmra.mrb[4].mxu0 %vm645_vm5, %v634_v19 }
 0x399   :  { %1869 = vmatprep.mubr.msk.f32.mxu0 %vm645_vm5, %v635_v20 }
 0x39c   :  { %1870 = vmatmul.mubr.msk.f32.gmra.mrb[6].mxu0 %vm645_vm5, %v636_v24 }
 0x39d   :  { %1872 = vmatprep.mubr.msk.f32.mxu0 %vm645_vm5, %v637_v25 }
 0x3a0   :  { %1873 = vmatmul.mubr.msk.f32.gmra.mrb[8].mxu0 %vm645_vm5, %v638_v28 }
 0x3a1   :  { %1875 = vmatprep.mubr.msk.f32.mxu0 %vm645_vm5, %v639_v29 }
 0x3a4   :  { %1876 = vmatmul.mubr.msk.f32.gmra.mrb[10].mxu0 %vm645_vm5, %v640_v31 }
 0x46b   :  { %v1868_v33 = vpop.f32.mrb[4].mxu0 }
 0x46c   :  { %v736_v34 = vpop.f32.mrb[5].mxu0  ;;  %v776_v36 = vsel %vm645_vm5, %v1868_v33, -inf }
 0x46d   :  { %v775_v39 = vsel %vm645_vm5, %v736_v34, -inf }
 0x46f   :  { %v1871_v48 = vpop.f32.mrb[6].mxu0 }
 0x470   :  { %v746_v57 = vpop.f32.mrb[7].mxu0  ;;  %v778_v50 = vsel %vm645_vm5, %v1871_v48, -inf }
 0x471   :  { %v777_v54 = vsel %vm645_vm5, %v746_v57, -inf }
 0x473   :  { %v1874_v35 = vpop.f32.mrb[8].mxu0 }
 0x474   :  { %v781_v37 = vsel %vm645_vm5, %v1874_v35, -inf  ;;  %v756_v38 = vpop.f32.mrb[9].mxu0 }
 0x475   :  { %v782_v43 = vmax.f32 %v776_v36, %v781_v37  ;;  %v779_v45 = vsel %vm645_vm5, %v756_v38, -inf }
 0x476   :  { %v780_v46 = vmax.f32 %v775_v39, %v779_v45 }
 0x477   :  { %v1877_v49 = vpop.f32.mrb[10].mxu0 }
 0x478   :  { %v787_v51 = vmax.f32 %v780_v46, %v782_v43  ;;  %v785_v52 = vsel %vm645_vm5, %v1877_v49, -inf  ;;  %v766_v53 = vpop.f32.mrb[11].mxu0 }
 0x479   :  { %v786_v55 = vmax.f32 %v778_v50, %v785_v52  ;;  %v783_v56 = vsel %vm645_vm5, %v766_v53, -inf }
 0x47a   :  { %v784_v59 = vmax.f32 %v777_v54, %v783_v56 }
 0x47c   :  { %v788_v60 = vmax.f32 %v784_v59, %v786_v55 }
 0x47e   :  { %v789_v61 = vmax.f32 %v787_v51, %v788_v60 }
 0x480   :  { %v790_v62 = vrot.slane %v789_v61, 4 }
 0x482   :  { %v791_v63 = vmax.f32 %v789_v61, %v790_v62 }
 0x484   :  { %v792_v0 = vrot.slane %v791_v63, 2 }
 0x486   :  { %v793_v1 = vmax.f32 %v791_v63, %v792_v0 }
 0x488   :  { %v794_v2 = vrot.slane %v793_v1, 1 }
 0x48a   :  { %v795_v4 = vmax.f32 %v793_v1, %v794_v2 }
 0x48c   :  { %v796_v6 = vsub.f32 %v736_v34, %v795_v4  ;;  %v797_v7 = vsub.f32 %v1868_v33, %v795_v4  ;;  %v798_v8 = vsub.f32 %v746_v57, %v795_v4  ;;  %v799_v40 = vsub.f32 %v1871_v48, %v795_v4 }
 0x48d   :  { %v800_v10 = vsub.f32 %v756_v38, %v795_v4  ;;  %v801_v11 = vsub.f32 %v1874_v35, %v795_v4  ;;  %v802_v12 = vsub.f32 %v766_v53, %v795_v4  ;;  %v803_v13 = vsub.f32 %v1877_v49, %v795_v4 }
 0x48e   :  { %v804_v14 = vmul.f32 1.442695, %v796_v6  ;;  %v806_v17 = vmul.f32 1.442695, %v797_v7  ;;  %v808_v18 = vmul.f32 1.442695, %v798_v8 }
 0x48f   :  { %v810_v19 = vmul.f32 1.442695, %v799_v40  ;;  %v812_v20 = vmul.f32 1.442695, %v800_v10  ;;  %v814_v23 = vmul.f32 1.442695, %v801_v11 }
 0x490   :  { %2282 = vpow2.f32 %v804_v14  ;;  %v816_v24 = vmul.f32 1.442695, %v802_v12  ;;  %v818_v25 = vmul.f32 1.442695, %v803_v13 }
 0x491   :  { %2284 = vpow2.f32 %v806_v17 }
 0x492   :  { %2286 = vpow2.f32 %v808_v18  ;;  %v2654_v18 = vld [vmem:[#allocation2 + $0x8] sm:$0xff] }
 0x493   :  { %2288 = vpow2.f32 %v810_v19  ;;  %v983_v19 = vld [vmem:[%s2775_s5 + $0x8] sm:$0x3]  ;;  %s1749_s5 = sld [smem:[#allocation10 + $0x1]] }
 0x494   :  { %2290 = vpow2.f32 %v812_v20 }
 0x495   :  { %2292 = vpow2.f32 %v814_v23 }
 0x496   :  { %2294 = vpow2.f32 %v816_v24  ;;  %v928_v24 = vstv %s2669_s14 }
 0x497   :  { %2296 = vpow2.f32 %v818_v25 }
 0x49a   :  { %v2283_v28 = vpop.eup %2282 }
 0x49b   :  { %v2285_v29 = vpop.eup %2284  ;;  %v820_v31 = vsel %vm645_vm5, %v2283_v28, 0.0 }
 0x49c   :  { %v2287_v33 = vpop.eup %2286  ;;  %v821_v34 = vsel %vm645_vm5, %v2285_v29, 0.0 }
 0x49d   :  { %v2289_v48 = vpop.eup %2288  ;;  %v822_v57 = vadd.f32 %v821_v34, %v820_v31  ;;  %v823_v35 = vsel %vm645_vm5, %v2287_v33, 0.0 }
 0x49e   :  { %v2291_v36 = vpop.eup %2290  ;;  %v825_v38 = vsel %vm645_vm5, %v2289_v48, 0.0 }
 0x49f   :  { %v824_v37 = vadd.f32 %v823_v35, %v822_v57  ;;  %v2293_v39 = vpop.eup %2292  ;;  %v827_v45 = vsel %vm645_vm5, %v2291_v36, 0.0 }
 0x4a0   :  { %v2295_v46 = vpop.eup %2294  ;;  %v829_v50 = vsel %vm645_vm5, %v2293_v39, 0.0 }
 0x4a1   :  { %v826_v43 = vadd.f32 %v825_v38, %v824_v37  ;;  %v2297_v51 = vpop.eup %2296  ;;  %v831_v53 = vsel %vm645_vm5, %v2295_v46, 0.0 }
 0x4a2   :  { %v833_v55 = vsel %vm645_vm5, %v2297_v51, 0.0 }
 0x4a3   :  { %v828_v49 = vadd.f32 %v827_v45, %v826_v43 }
 0x4a5   :  { %v830_v52 = vadd.f32 %v829_v50, %v828_v49 }
 0x4a7   :  { %v832_v54 = vadd.f32 %v831_v53, %v830_v52 }
 0x4a9   :  { %v834_v56 = vadd.f32 %v833_v55, %v832_v54 }
 0x4ab   :  { %v835_v59 = vrot.slane %v834_v56, 4 }
 0x4ad   :  { %v836_v60 = vadd.f32 %v835_v59, %v834_v56 }
 0x4af   :  { %v837_v61 = vrot.slane %v836_v60, 2 }
 0x4b1   :  { %v838_v62 = vadd.f32 %v837_v61, %v836_v60 }
 0x4b3   :  { %v839_v63 = vrot.slane %v838_v62, 1 }
 0x4b5   :  { %v840_v0 = vadd.f32 %v839_v63, %v838_v62 }
 0x4b7   :  { %2298 = vrcp.f32 %v840_v0 }
 0x4c1   :  { %v2299_v1 = vpop.eup %2298 }
 0x4c2   :  { %v842_v2 = vmul.f32 %v2299_v1, %v2283_v28  ;;  %v843_v4 = vmul.f32 %v2299_v1, %v2285_v29  ;;  %v844_v6 = vmul.f32 %v2299_v1, %v2287_v33  ;;  %v845_v7 = vmul.f32 %v2299_v1, %v2289_v48  ;;  %v994_v33 = vpop.permute.xlu0 %993 }
 0x4c3   :  { %v846_v8 = vmul.f32 %v2299_v1, %v2291_v36  ;;  %v847_v40 = vmul.f32 %v2299_v1, %v2293_v39  ;;  %v848_v10 = vmul.f32 %v2299_v1, %v2295_v46  ;;  %v849_v11 = vmul.f32 %v2299_v1, %v2297_v51 }
 0x4c4   :  { %v2094_v12 = vpack.c.bf16 %v843_v4, %v842_v2  ;;  %v2097_v13 = vpack.c.bf16 %v845_v7, %v844_v6 }
 0x4c5   :  { %v2100_v14 = vpack.c.bf16 %v847_v40, %v846_v8  ;;  %v2103_v17 = vpack.c.bf16 %v849_v11, %v848_v10 }
 0x4c6   :  { %2095 = vmatpush3.bf16.msra.mxu1 %v2094_v12 }
 0x4c7   :  { %2096 = vmatprep.subr.bf16.mxu1 %v2414_v32 }
 0x4ca   :  { %2098 = vmatpush3.bf16.msra.mxu1 %v2097_v13 }
 0x4cb   :  { %2099 = vmatprep.subr.bf16.mxu1 %v2414_v32 }
 0x4ce   :  { %2101 = vmatpush3.bf16.msra.mxu1 %v2100_v14 }
 0x4cf   :  { %2102 = vmatprep.subr.bf16.mxu1 %v2414_v32 }
 0x4d2   :  { %2104 = vmatpush3.bf16.msra.mxu1 %v2103_v17 }
 0x4d3   :  { %1897 = vmatprep.subr.mxu1 %v2654_v18 }
 0x4d5   :  { %1895 = vmatmul.mubr.msk.f32.vlgmr.msra.gmra.mrb[4].mxu1 %vm645_vm5, %v2586_v9  ;;  %v2416_v9 = vmov 1983009808  }
 0x4d6   :  { %1898 = vmatpush3.msra.mxu1 %v2654_v18  ;;  %1899 = vmatprep.mubr.msk.f32.mxu1 %vm89_vm0, %v2543_v47  ;;  %v934_v20 = vunpack.c.l.s4 %v2416_v9 }
 0x4d7   :  { %2121 = vmatprep.subr.bf16.mxu1 %v2414_v32 }
 0x4d8   :  { %v935_v23 = vunpack.c.0.s8 %v934_v20 }
 0x4d9   :  { %1900 = vmatmul.mubr.msk.f32.vlgmr.msra.gmra.mrb[6].mxu1 %vm89_vm0, %v983_v19 }
 0x4da   :  { %1946 = vmatprep.mubr.msk.f32.mxu1 %vm2415_vm13, %v2411_v3  ;;  %v2675_v29 = vsub.s32 %v935_v23, %v2507_v41  ;;  %v989_v3 = vpop.permute.xlu1 %988 }
 0x5a8   :  { %v924_v47 = vpop.f32.mrb[4].mxu1 }
 0x5a9   :  { %v929_v25 = vmul.f32 %v928_v24, %v924_v47  ;;  %v1896_v28 = vpop.f32.mrb[5].mxu1 }
 0x5ab   :  { %v930_v31 = vadd.f32 %v929_v25, %v2570_v58 }
 0x5ac   :  { %v1901_v34 = vpop.f32.mrb[6].mxu1 }
 0x5ad   :  { %v956_v48 = vcombine.high %v930_v31, %v930_v31  ;;  %931 = vst.msk [vmem:[#allocation3] sm:$0x1] %vm462_vm1, %v930_v31  ;;  %v1074_v57 = vadd.f32 %v1901_v34, %v994_v33  ;;  %v1068_v35 = vpop.f32.mrb[7].mxu1  ;;  %v939_v36 = vrot.slane %v930_v31, %v2675_v29 }
 0x5ae   :  { %v1069_v37 = vadd.f32 %v1068_v35, %v989_v3 }
 0x5af   :  { %v1769_v38 = vrot.slane %v939_v36, 9  ;;  %v947_v39 = vcombine.high %v939_v36, %v939_v36  ;;  %v963_v43 = vrot.slane %v956_v48, %v2675_v29  ;;  %v1300_v45 = vrot.slane %v1074_v57, 2 }
 0x5b0   :  { %v1080_v41 = vrot.slane %v1069_v37, %v2516_v44  ;;  %v1092_v58 = vrot.slane %v1069_v37, %v2510_v42  ;;  %v1299_v46 = vrot.slane %v1069_v37, 2 }
 0x5b1   :  { %942 = vrot.lane.b32.xlu1 %v1769_v38, %s2412_s25  ;;  %v1770_v49 = vrot.slane %v947_v39, 9  ;;  %949 = vst.msk [vmem:[#allocation3 + $0x2] sm:$0x1] %vm462_vm1, %v947_v39  ;;  %965 = vst.msk [vmem:[#allocation3 + $0x4] sm:$0x1] %vm462_vm1, %v963_v43  ;;  %v972_v50 = vcombine.high %v963_v43, %v963_v43  ;;  %v1771_v53 = vrot.slane %v963_v43, 9 }
 0x5b2   :  { %v2105_v51 = vpack.c.bf16 %v1092_v58, %v1092_v58  ;;  %v1081_v52 = vmul.f32 %v2581_v5, %v1080_v41  ;;  %v2691_v42 = vsel %vm852_vm4, %v1299_v46, %v1300_v45  ;;  %v1082_v5 = vmul.f32 %v2595_v15, %v1080_v41 }
 0x5b3   :  { %952 = vrot.lane.b32.xlu0 %v1770_v49, %s2412_s25  ;;  %974 = vst.msk [vmem:[#allocation3 + $0x6] sm:$0x1] %vm462_vm1, %v972_v50  ;;  %v1772_v44 = vrot.slane %v972_v50, 9  ;;  %v1083_v54 = vmul.f32 %v2598_v16, %v1080_v41  ;;  %v1084_v55 = vmul.f32 %v2605_v21, %v1080_v41  ;;  %v1085_v56 = vmul.f32 %v2609_v22, %v1080_v41 }
 0x5b4   :  { %2106 = vmatprep.subr.bf16.mxu0 %v2105_v51  ;;  %1918 = vmatprep.mubr.msk.f32.mxu0 %vm645_vm5, %v1081_v52  ;;  %v1086_v59 = vmul.f32 %v2616_v26, %v1080_v41  ;;  %v1087_v60 = vmul.f32 %v2620_v27, %v1080_v41  ;;  %v1088_v15 = vmul.f32 %v2626_v30, %v1080_v41 }
 0x5b5   :  { %968 = vrot.lane.b32.xlu1 %v1771_v53, %s2412_s25  ;;  %2108 = vmatpush3.bf16.msra.mxu0 %v2105_v51 }
 0x5b6   :  { %2110 = vmatprep.subr.bf16.mxu0 %v2105_v51 }
 0x5b7   :  { %977 = vrot.lane.b32.xlu0 %v1772_v44, %s2412_s25 }
 0x5b9   :  { %2112 = vmatpush3.bf16.msra.mxu0 %v2105_v51 }
 0x5ba   :  { %2114 = vmatprep.subr.bf16.mxu0 %v2105_v51 }
 0x5bd   :  { %2116 = vmatpush3.bf16.msra.mxu0 %v2105_v51 }
 0x5be   :  { %2118 = vmatprep.subr.bf16.mxu0 %v2105_v51 }
 0x5c1   :  { %2120 = vmatpush3.bf16.msra.mxu0 %v2105_v51 }
 0x5c4   :  { %1919 = vmatmul.mubr.msk.f32.vlgmr.msra.gmra.mrb[12].mxu0 %vm645_vm5, %v1082_v5 }
 0x5c5   :  { %1921 = vmatprep.mubr.msk.f32.mxu0 %vm645_vm5, %v1083_v54 }
 0x5c8   :  { %1922 = vmatmul.mubr.msk.f32.gmra.mrb[14].mxu0 %vm645_vm5, %v1084_v55 }
 0x5c9   :  { %1924 = vmatprep.mubr.msk.f32.mxu0 %vm645_vm5, %v1085_v56 }
 0x5cc   :  { %1925 = vmatmul.mubr.msk.f32.gmra.mrb[16].mxu0 %vm645_vm5, %v1086_v59 }
 0x5cd   :  { %1927 = vmatprep.mubr.msk.f32.mxu0 %vm645_vm5, %v1087_v60 }
 0x5d0   :  { %1928 = vmatmul.mubr.msk.f32.gmra.mrb[18].mxu0 %vm645_vm5, %v1088_v15 }
 0x623   :  { %v943_v16 = vpop.permute.xlu1 %942 }
 0x624   :  { %946 = vst.msk [vmem:[#allocation3] sm:$0x1] %vm945_vm14, %v943_v16 }
 0x625   :  { %v953_v21 = vpop.permute.xlu0 %952 }
 0x626   :  { %955 = vst.msk [vmem:[#allocation3 + $0x2] sm:$0x1] %vm945_vm14, %v953_v21 }
 0x627   :  { %v969_v22 = vpop.permute.xlu1 %968 }
 0x628   :  { %971 = vst.msk [vmem:[#allocation3 + $0x4] sm:$0x1] %vm945_vm14, %v969_v22 }
 0x629   :  { %v978_v26 = vpop.permute.xlu0 %977 }
 0x62a   :  { %980 = vst.msk [vmem:[#allocation3 + $0x6] sm:$0x1] %vm945_vm14, %v978_v26 }
 0x697   :  { %v1920_v27 = vpop.f32.mrb[12].mxu0 }
 0x698   :  { %v1183_v61 = vpop.f32.mrb[13].mxu0  ;;  %v1223_v0 = vsel %vm645_vm5, %v1920_v27, -inf }
 0x699   :  { %v1222_v4 = vsel %vm645_vm5, %v1183_v61, -inf }
 0x69b   :  { %v1923_v62 = vpop.f32.mrb[14].mxu0 }
 0x69c   :  { %v1193_v63 = vpop.f32.mrb[15].mxu0  ;;  %v1225_v10 = vsel %vm645_vm5, %v1923_v62, -inf }
 0x69d   :  { %v1224_v14 = vsel %vm645_vm5, %v1193_v63, -inf }
 0x69f   :  { %v1926_v30 = vpop.f32.mrb[16].mxu0 }
 0x6a0   :  { %v1228_v1 = vsel %vm645_vm5, %v1926_v30, -inf  ;;  %v1203_v2 = vpop.f32.mrb[17].mxu0 }
 0x6a1   :  { %v1229_v6 = vmax.f32 %v1223_v0, %v1228_v1  ;;  %v1226_v7 = vsel %vm645_vm5, %v1203_v2, -inf }
 0x6a2   :  { %v1227_v8 = vmax.f32 %v1222_v4, %v1226_v7 }
 0x6a3   :  { %v1929_v40 = vpop.f32.mrb[18].mxu0 }
 0x6a4   :  { %v1234_v11 = vmax.f32 %v1227_v8, %v1229_v6  ;;  %v1232_v12 = vsel %vm645_vm5, %v1929_v40, -inf  ;;  %v1213_v13 = vpop.f32.mrb[19].mxu0 }
 0x6a5   :  { %v1233_v17 = vmax.f32 %v1225_v10, %v1232_v12  ;;  %v1230_v19 = vsel %vm645_vm5, %v1213_v13, -inf }
 0x6a6   :  { %v1231_v9 = vmax.f32 %v1224_v14, %v1230_v19 }
 0x6a8   :  { %v1235_v20 = vmax.f32 %v1231_v9, %v1233_v17 }
 0x6aa   :  { %v1236_v23 = vmax.f32 %v1234_v11, %v1235_v20 }
 0x6ac   :  { %v1237_v47 = vrot.slane %v1236_v23, 4 }
 0x6ae   :  { %v1238_v25 = vmax.f32 %v1236_v23, %v1237_v47 }
 0x6b0   :  { %v1239_v28 = vrot.slane %v1238_v25, 2 }
 0x6b2   :  { %v1240_v31 = vmax.f32 %v1238_v25, %v1239_v28 }
 0x6b4   :  { %v1241_v33 = vrot.slane %v1240_v31, 1 }
 0x6b6   :  { %v1242_v34 = vmax.f32 %v1240_v31, %v1241_v33 }
 0x6b8   :  { %v1243_v3 = vsub.f32 %v1183_v61, %v1242_v34  ;;  %v1244_v48 = vsub.f32 %v1920_v27, %v1242_v34  ;;  %v1245_v57 = vsub.f32 %v1193_v63, %v1242_v34  ;;  %v1246_v35 = vsub.f32 %v1923_v62, %v1242_v34 }
 0x6b9   :  { %v1247_v36 = vsub.f32 %v1203_v2, %v1242_v34  ;;  %v1248_v37 = vsub.f32 %v1926_v30, %v1242_v34  ;;  %v1249_v38 = vsub.f32 %v1213_v13, %v1242_v34  ;;  %v1250_v39 = vsub.f32 %v1929_v40, %v1242_v34  ;;  %v1427_v34 = vld [vmem:[#allocation8 + $0x8] sm:$0xff] }
 0x6ba   :  { %v1251_v43 = vmul.f32 1.442695, %v1243_v3  ;;  %v1253_v45 = vmul.f32 1.442695, %v1244_v48  ;;  %v1255_v41 = vmul.f32 1.442695, %v1245_v57 }
 0x6bb   :  { %v1257_v58 = vmul.f32 1.442695, %v1246_v35  ;;  %v1259_v46 = vmul.f32 1.442695, %v1247_v36  ;;  %v1261_v49 = vmul.f32 1.442695, %v1248_v37 }
 0x6bc   :  { %2300 = vpow2.f32 %v1251_v43  ;;  %v1263_v50 = vmul.f32 1.442695, %v1249_v38  ;;  %v1265_v51 = vmul.f32 1.442695, %v1250_v39  ;;  %v1429_v3 = vld [vmem:[#allocation8 + $0x18] sm:$0xff]  ;;  %v1426_v48 = vld [vmem:[#allocation8] sm:$0xff] }
 0x6bd   :  { %2302 = vpow2.f32 %v1253_v45  ;;  %v2133_v57 = vpack.c.bf16 %v1429_v3, %v1427_v34  ;;  %v1428_v35 = vld [vmem:[#allocation8 + $0x10] sm:$0xff]  ;;  %v1431_v36 = vld [vmem:[#allocation8 + $0x28] sm:$0xff]  ;;  %v1433_v37 = vld [vmem:[#allocation8 + $0x38] sm:$0xff] }
 0x6be   :  { %2304 = vpow2.f32 %v1255_v41  ;;  %v2135_v38 = vpack.c.bf16 %v1428_v35, %v1426_v48  ;;  %v2137_v39 = vpack.c.bf16 %v1433_v37, %v1431_v36  ;;  %v1430_v43 = vld [vmem:[#allocation8 + $0x20] sm:$0xff]  ;;  %v1432_v45 = vld [vmem:[#allocation8 + $0x30] sm:$0xff]  ;;  %v1435_v41 = vld [vmem:[#allocation8 + $0x48] sm:$0xff] }
 0x6bf   :  { %2306 = vpow2.f32 %v1257_v58  ;;  %2134 = vmatprep.subr.bf16.mxu0 %v2133_v57  ;;  %v1437_v58 = vld [vmem:[#allocation8 + $0x58] sm:$0xff]  ;;  %v1466_v48 = vld [vmem:[#allocation8 + $0x140] sm:$0xff]  ;;  %v1468_v57 = vld [vmem:[#allocation8 + $0x150] sm:$0xff] }
 0x6c0   :  { %2308 = vpow2.f32 %v1259_v46  ;;  %2136 = vmatpush1.bf16.msra.mxu0 %v2135_v38  ;;  %v2141_v46 = vpack.c.bf16 %v1437_v58, %v1435_v41  ;;  %v1471_v35 = vld [vmem:[#allocation8 + $0x168] sm:$0xff]  ;;  %v1473_v36 = vld [vmem:[#allocation8 + $0x178] sm:$0xff]  ;;  %v2175_v37 = vpack.c.bf16 %v1468_v57, %v1466_v48  ;;  %v1494_v57 = vld [vmem:[#allocation8 + $0x220] sm:$0xff] }
 0x6c1   :  { %2310 = vpow2.f32 %v1261_v49  ;;  %2138 = vmatprep.subr.bf16.mxu0 %v2137_v39  ;;  %v1434_v49 = vld [vmem:[#allocation8 + $0x40] sm:$0xff]  ;;  %v2177_v38 = vpack.c.bf16 %v1473_v36, %v1471_v35  ;;  %v1475_v41 = vld [vmem:[#allocation8 + $0x188] sm:$0xff]  ;;  %v1477_v58 = vld [vmem:[#allocation8 + $0x198] sm:$0xff] }
 0x6c2   :  { %2312 = vpow2.f32 %v1263_v50  ;;  %v1439_v50 = vld [vmem:[#allocation8 + $0x68] sm:$0xff]  ;;  %v1470_v39 = vld [vmem:[#allocation8 + $0x160] sm:$0xff]  ;;  %v1496_v35 = vld [vmem:[#allocation8 + $0x230] sm:$0xff] }
 0x6c3   :  { %2314 = vpow2.f32 %v1265_v51  ;;  %v1441_v51 = vld [vmem:[#allocation8 + $0x78] sm:$0xff] }
 0x6c6   :  { %v2301_v52 = vpop.eup %2300 }
 0x6c7   :  { %v2303_v53 = vpop.eup %2302  ;;  %v1267_v44 = vsel %vm645_vm5, %v2301_v52, 0.0 }
 0x6c8   :  { %v2305_v5 = vpop.eup %2304  ;;  %v1268_v54 = vsel %vm645_vm5, %v2303_v53, 0.0 }
 0x6c9   :  { %v2307_v55 = vpop.eup %2306  ;;  %v1269_v56 = vadd.f32 %v1268_v54, %v1267_v44  ;;  %v1270_v59 = vsel %vm645_vm5, %v2305_v5, 0.0  ;;  %v1438_v44 = vld [vmem:[#allocation8 + $0x60] sm:$0xff]  ;;  %v1443_v54 = vld [vmem:[#allocation8 + $0x88] sm:$0xff] }
 0x6ca   :  { %v2309_v60 = vpop.eup %2308  ;;  %v1272_v16 = vsel %vm645_vm5, %v2307_v55, 0.0 }
 0x6cb   :  { %v1271_v15 = vadd.f32 %v1270_v59, %v1269_v56  ;;  %v2311_v21 = vpop.eup %2310  ;;  %v1274_v26 = vsel %vm645_vm5, %v2309_v60, 0.0 }
 0x6cc   :  { %v2313_v27 = vpop.eup %2312  ;;  %v1276_v62 = vsel %vm645_vm5, %v2311_v21, 0.0 }
 0x6cd   :  { %v1273_v22 = vadd.f32 %v1272_v16, %v1271_v15  ;;  %v2315_v63 = vpop.eup %2314  ;;  %v1278_v0 = vsel %vm645_vm5, %v2313_v27, 0.0  ;;  %v1444_v15 = vld [vmem:[#allocation8 + $0x90] sm:$0xff]  ;;  %v1447_v16 = vld [vmem:[#allocation8 + $0xa8] sm:$0xff] }
 0x6ce   :  { %v1280_v2 = vsel %vm645_vm5, %v2315_v63, 0.0 }
 0x6cf   :  { %v1275_v61 = vadd.f32 %v1274_v26, %v1273_v22 }
 0x6d1   :  { %v1277_v30 = vadd.f32 %v1276_v62, %v1275_v61  ;;  %v1448_v61 = vld [vmem:[#allocation8 + $0xb0] sm:$0xff]  ;;  %v1451_v62 = vld [vmem:[#allocation8 + $0xc8] sm:$0xff] }
 0x6d3   :  { %v1279_v1 = vadd.f32 %v1278_v0, %v1277_v30 }
 0x6d5   :  { %v1281_v4 = vadd.f32 %v1280_v2, %v1279_v1  ;;  %v1450_v1 = vld [vmem:[#allocation8 + $0xc0] sm:$0xff]  ;;  %v1452_v2 = vld [vmem:[#allocation8 + $0xd0] sm:$0xff] }
 0x6d7   :  { %v1282_v6 = vrot.slane %v1281_v4, 4 }
 0x6d9   :  { %v1283_v7 = vadd.f32 %v1282_v6, %v1281_v4  ;;  %v1455_v4 = vld [vmem:[#allocation8 + $0xe8] sm:$0xff]  ;;  %v1457_v6 = vld [vmem:[#allocation8 + $0xf8] sm:$0xff] }
 0x6db   :  { %v1284_v8 = vrot.slane %v1283_v7, 2 }
 0x6dd   :  { %v1285_v40 = vadd.f32 %v1284_v8, %v1283_v7  ;;  %v2159_v7 = vpack.c.bf16 %v1452_v2, %v1450_v1  ;;  %v2161_v8 = vpack.c.bf16 %v1457_v6, %v1455_v4  ;;  %v1486_v1 = vld [vmem:[#allocation8 + $0x1e0] sm:$0xff]  ;;  %v1488_v2 = vld [vmem:[#allocation8 + $0x1f0] sm:$0xff] }
 0x6df   :  { %v1286_v10 = vrot.slane %v1285_v40, 1 }
 0x6e1   :  { %v1287_v11 = vadd.f32 %v1286_v10, %v1285_v40  ;;  %v1454_v40 = vld [vmem:[#allocation8 + $0xe0] sm:$0xff]  ;;  %v1456_v10 = vld [vmem:[#allocation8 + $0xf0] sm:$0xff] }
 0x6e3   :  { %2316 = vrcp.f32 %v1287_v11  ;;  %v1459_v11 = vld [vmem:[#allocation8 + $0x108] sm:$0xff] }
 0x6ed   :  { %v2317_v12 = vpop.eup %2316 }
 0x6ee   :  { %v1289_v13 = vmul.f32 %v2317_v12, %v2301_v52  ;;  %v1290_v14 = vmul.f32 %v2317_v12, %v2303_v53  ;;  %v1291_v17 = vmul.f32 %v2317_v12, %v2305_v5  ;;  %v1292_v19 = vmul.f32 %v2317_v12, %v2307_v55  ;;  %v1440_v5 = vld [vmem:[#allocation8 + $0x70] sm:$0xff]  ;;  %v1445_v55 = vld [vmem:[#allocation8 + $0x98] sm:$0xff] }
 0x6ef   :  { %v1293_v9 = vmul.f32 %v2317_v12, %v2309_v60  ;;  %v1294_v20 = vmul.f32 %v2317_v12, %v2311_v21  ;;  %v1295_v23 = vmul.f32 %v2317_v12, %v2313_v27  ;;  %v1296_v47 = vmul.f32 %v2317_v12, %v2315_v63  ;;  %v1442_v60 = vld [vmem:[#allocation8 + $0x80] sm:$0xff]  ;;  %v1449_v21 = vld [vmem:[#allocation8 + $0xb8] sm:$0xff] }
 0x6f0   :  { %v2122_v25 = vpack.c.bf16 %v1290_v14, %v1289_v13  ;;  %v2125_v28 = vpack.c.bf16 %v1292_v19, %v1291_v17  ;;  %v2145_v53 = vpack.c.bf16 %v1441_v51, %v1439_v50  ;;  %v2147_v56 = vpack.c.bf16 %v1440_v5, %v1438_v44  ;;  %v1446_v27 = vld [vmem:[#allocation8 + $0xa0] sm:$0xff]  ;;  %v1453_v63 = vld [vmem:[#allocation8 + $0xd8] sm:$0xff]  ;;  %v1460_v19 = vld [vmem:[#allocation8 + $0x110] sm:$0xff] }
 0x6f1   :  { %v2128_v31 = vpack.c.bf16 %v1294_v20, %v1293_v9  ;;  %v2131_v33 = vpack.c.bf16 %v1296_v47, %v1295_v23  ;;  %v2149_v59 = vpack.c.bf16 %v1445_v55, %v1443_v54  ;;  %v2151_v22 = vpack.c.bf16 %v1444_v15, %v1442_v60  ;;  %v1461_v12 = vld [vmem:[#allocation8 + $0x118] sm:$0xff]  ;;  %v1458_v17 = vld [vmem:[#allocation8 + $0x100] sm:$0xff]  ;;  %v1463_v9 = vld [vmem:[#allocation8 + $0x128] sm:$0xff] }
 0x6f2   :  { %2123 = vmatpush3.bf16.msra.mxu1 %v2122_v25  ;;  %v2153_v26 = vpack.c.bf16 %v1449_v21, %v1447_v16  ;;  %v2155_v30 = vpack.c.bf16 %v1448_v61, %v1446_v27  ;;  %v2157_v0 = vpack.c.bf16 %v1453_v63, %v1451_v62  ;;  %v2163_v13 = vpack.c.bf16 %v1456_v10, %v1454_v40  ;;  %v1465_v20 = vld [vmem:[#allocation8 + $0x138] sm:$0xff]  ;;  %v1462_v25 = vld [vmem:[#allocation8 + $0x120] sm:$0xff]  ;;  %v1491_v10 = vld [vmem:[#allocation8 + $0x208] sm:$0xff] }
 0x6f3   :  { %2124 = vmatprep.subr.bf16.mxu1 %v2414_v32  ;;  %v2165_v14 = vpack.c.bf16 %v1461_v12, %v1459_v11  ;;  %v2167_v23 = vpack.c.bf16 %v1460_v19, %v1458_v17  ;;  %v2169_v47 = vpack.c.bf16 %v1465_v20, %v1463_v9  ;;  %v1481_v44 = vld [vmem:[#allocation8 + $0x1b8] sm:$0xff]  ;;  %v1478_v5 = vld [vmem:[#allocation8 + $0x1a0] sm:$0xff] }
 0x6f4   :  { %v1485_v60 = vld [vmem:[#allocation8 + $0x1d8] sm:$0xff]  ;;  %v1482_v21 = vld [vmem:[#allocation8 + $0x1c0] sm:$0xff] }
 0x6f5   :  { %v1489_v61 = vld [vmem:[#allocation8 + $0x1f8] sm:$0xff]  ;;  %v1490_v20 = vld [vmem:[#allocation8 + $0x200] sm:$0xff] }
 0x6f6   :  { %2126 = vmatpush3.bf16.msra.mxu1 %v2125_v28  ;;  %v1464_v28 = vld [vmem:[#allocation8 + $0x130] sm:$0xff]  ;;  %v1493_v11 = vld [vmem:[#allocation8 + $0x218] sm:$0xff] }
 0x6f7   :  { %2127 = vmatprep.subr.bf16.mxu1 %v2414_v32  ;;  %v2171_v34 = vpack.c.bf16 %v1464_v28, %v1462_v25  ;;  %v2197_v12 = vpack.c.bf16 %v1493_v11, %v1491_v10  ;;  %v1495_v28 = vld [vmem:[#allocation8 + $0x228] sm:$0xff]  ;;  %v1529_v10 = vld [vmem:[#allocation8 + $0x338] sm:$0xff] }
 0x6fa   :  { %2129 = vmatpush3.bf16.msra.mxu1 %v2128_v31  ;;  %v1467_v31 = vld [vmem:[#allocation8 + $0x148] sm:$0xff] }
 0x6fb   :  { %2130 = vmatprep.subr.bf16.mxu1 %v2414_v32  ;;  %v2139_v32 = vpack.c.bf16 %v1432_v45, %v1430_v43  ;;  %v1472_v43 = vld [vmem:[#allocation8 + $0x170] sm:$0xff] }
 0x6fc   :  { %v2179_v45 = vpack.c.bf16 %v1472_v43, %v1470_v39  ;;  %v2203_v39 = vpack.c.bf16 %v1496_v35, %v1494_v57  ;;  %v1539_v57 = vld [vmem:[#allocation8 + $0x388] sm:$0xff]  ;;  %v1541_v35 = vld [vmem:[#allocation8 + $0x398] sm:$0xff] }
 0x6fd   :  { %2140 = vmatpush1.bf16.msra.mxu0 %v2139_v32  ;;  %v1474_v32 = vld [vmem:[#allocation8 + $0x180] sm:$0xff] }
 0x6fe   :  { %2132 = vmatpush3.bf16.msra.mxu1 %v2131_v33  ;;  %2142 = vmatprep.subr.bf16.mxu0 %v2141_v46  ;;  %v1469_v33 = vld [vmem:[#allocation8 + $0x158] sm:$0xff]  ;;  %v2181_v46 = vpack.c.bf16 %v1477_v58, %v1475_v41  ;;  %v1500_v41 = vld [vmem:[#allocation8 + $0x250] sm:$0xff]  ;;  %v1503_v58 = vld [vmem:[#allocation8 + $0x268] sm:$0xff] }
 0x6ff   :  { %v2173_v3 = vpack.c.bf16 %v1469_v33, %v1467_v31  ;;  %v1497_v31 = vld [vmem:[#allocation8 + $0x238] sm:$0xff] }
 0x700   :  { %v2201_v48 = vpack.c.bf16 %v1497_v31, %v1495_v28  ;;  %v1537_v28 = vld [vmem:[#allocation8 + $0x378] sm:$0xff] }
 0x701   :  { %1947 = vmatmul.mubr.msk.f32.vlgmr.msra.gmra.mrb[8].mxu1 %vm645_vm5, %v2691_v42  ;;  %v1436_v42 = vld [vmem:[#allocation8 + $0x50] sm:$0xff] }
 0x702   :  { %v2143_v52 = vpack.c.bf16 %v1436_v42, %v1434_v49  ;;  %v1476_v49 = vld [vmem:[#allocation8 + $0x190] sm:$0xff] }
 0x703   :  { %v2183_v50 = vpack.c.bf16 %v1476_v49, %v1474_v32  ;;  %v1502_v49 = vld [vmem:[#allocation8 + $0x260] sm:$0xff] }
 0x704   :  { %2144 = vmatpush1.bf16.msra.mxu0 %v2143_v52 }
 0x705   :  { %2146 = vmatprep.subr.bf16.mxu0 %v2145_v53  ;;  %v1479_v53 = vld [vmem:[#allocation8 + $0x1a8] sm:$0xff] }
 0x706   :  { %v2185_v55 = vpack.c.bf16 %v1481_v44, %v1479_v53  ;;  %v1506_v44 = vld [vmem:[#allocation8 + $0x280] sm:$0xff] }
 0x708   :  { %2148 = vmatpush1.bf16.msra.mxu0 %v2147_v56  ;;  %v1480_v56 = vld [vmem:[#allocation8 + $0x1b0] sm:$0xff] }
 0x709   :  { %2150 = vmatprep.subr.bf16.mxu0 %v2149_v59  ;;  %v1483_v59 = vld [vmem:[#allocation8 + $0x1c8] sm:$0xff]  ;;  %v2187_v15 = vpack.c.bf16 %v1480_v56, %v1478_v5  ;;  %v1508_v5 = vld [vmem:[#allocation8 + $0x290] sm:$0xff] }
 0x70a   :  { %v2189_v16 = vpack.c.bf16 %v1485_v60, %v1483_v59  ;;  %v2215_v56 = vpack.c.bf16 %v1508_v5, %v1506_v44  ;;  %v1510_v60 = vld [vmem:[#allocation8 + $0x2a0] sm:$0xff]  ;;  %v1553_v44 = vld [vmem:[#allocation8 + $0x3f8] sm:$0xff] }
 0x70c   :  { %2152 = vmatpush1.bf16.msra.mxu0 %v2151_v22  ;;  %v1484_v22 = vld [vmem:[#allocation8 + $0x1d0] sm:$0xff] }
 0x70d   :  { %2154 = vmatprep.subr.bf16.mxu0 %v2153_v26  ;;  %v1487_v26 = vld [vmem:[#allocation8 + $0x1e8] sm:$0xff]  ;;  %v2191_v62 = vpack.c.bf16 %v1484_v22, %v1482_v21  ;;  %v1517_v21 = vld [vmem:[#allocation8 + $0x2d8] sm:$0xff] }
 0x710   :  { %2156 = vmatpush1.bf16.msra.mxu0 %v2155_v30 }
 0x711   :  { %2158 = vmatprep.subr.bf16.mxu0 %v2157_v0  ;;  %v2193_v0 = vpack.c.bf16 %v1489_v61, %v1487_v26  ;;  %v1519_v61 = vld [vmem:[#allocation8 + $0x2e8] sm:$0xff] }
 0x714   :  { %2160 = vmatpush1.bf16.msra.mxu0 %v2159_v7  ;;  %v2195_v7 = vpack.c.bf16 %v1488_v2, %v1486_v1  ;;  %v1523_v1 = vld [vmem:[#allocation8 + $0x308] sm:$0xff]  ;;  %v1525_v2 = vld [vmem:[#allocation8 + $0x318] sm:$0xff] }
 0x715   :  { %2162 = vmatprep.subr.bf16.mxu0 %v2161_v8 }
 0x718   :  { %2164 = vmatpush1.bf16.msra.mxu0 %v2163_v13 }
 0x719   :  { %2166 = vmatprep.subr.bf16.mxu0 %v2165_v14 }
 0x71c   :  { %2168 = vmatpush1.bf16.msra.mxu0 %v2167_v23  ;;  %v1492_v23 = vld [vmem:[#allocation8 + $0x210] sm:$0xff] }
 0x71d   :  { %2170 = vmatprep.subr.bf16.mxu0 %v2169_v47 }
 0x720   :  { %2172 = vmatpush1.bf16.msra.mxu0 %v2171_v34  ;;  %v2199_v34 = vpack.c.bf16 %v1492_v23, %v1490_v20  ;;  %v1530_v23 = vld [vmem:[#allocation8 + $0x340] sm:$0xff] }
 0x721   :  { %2174 = vmatprep.subr.bf16.mxu0 %v2173_v3 }
 0x724   :  { %2176 = vmatpush1.bf16.msra.mxu0 %v2175_v37  ;;  %v1499_v37 = vld [vmem:[#allocation8 + $0x248] sm:$0xff] }
 0x725   :  { %2178 = vmatprep.subr.bf16.mxu0 %v2177_v38  ;;  %v1501_v38 = vld [vmem:[#allocation8 + $0x258] sm:$0xff] }
 0x726   :  { %v2205_v43 = vpack.c.bf16 %v1501_v38, %v1499_v37  ;;  %v2245_v37 = vpack.c.bf16 %v1541_v35, %v1539_v57  ;;  %v1538_v38 = vld [vmem:[#allocation8 + $0x380] sm:$0xff] }
 0x728   :  { %2180 = vmatpush1.bf16.msra.mxu0 %v2179_v45  ;;  %v1498_v45 = vld [vmem:[#allocation8 + $0x240] sm:$0xff] }
 0x729   :  { %2182 = vmatprep.subr.bf16.mxu0 %v2181_v46  ;;  %v2207_v32 = vpack.c.bf16 %v1500_v41, %v1498_v45  ;;  %v1545_v45 = vld [vmem:[#allocation8 + $0x3b8] sm:$0xff] }
 0x72c   :  { %2184 = vmatpush1.bf16.msra.mxu0 %v2183_v50  ;;  %v1507_v50 = vld [vmem:[#allocation8 + $0x288] sm:$0xff] }
 0x72d   :  { %2186 = vmatprep.subr.bf16.mxu0 %v2185_v55  ;;  %v1513_v55 = vld [vmem:[#allocation8 + $0x2b8] sm:$0xff] }
 0x730   :  { %2188 = vmatpush1.bf16.msra.mxu0 %v2187_v15  ;;  %v1512_v15 = vld [vmem:[#allocation8 + $0x2b0] sm:$0xff] }
 0x731   :  { %2190 = vmatprep.subr.bf16.mxu0 %v2189_v16  ;;  %v1515_v16 = vld [vmem:[#allocation8 + $0x2c8] sm:$0xff]  ;;  %v2219_v22 = vpack.c.bf16 %v1512_v15, %v1510_v60  ;;  %v1554_v60 = vstv %s1749_s5 }
 0x732   :  { %v2221_v26 = vpack.c.bf16 %v1517_v21, %v1515_v16 }
 0x734   :  { %2192 = vmatpush1.bf16.msra.mxu0 %v2191_v62  ;;  %v1521_v62 = vld [vmem:[#allocation8 + $0x2f8] sm:$0xff] }
 0x735   :  { %2194 = vmatprep.subr.bf16.mxu0 %v2193_v0  ;;  %v1520_v0 = vld [vmem:[#allocation8 + $0x2f0] sm:$0xff] }
 0x738   :  { %2196 = vmatpush1.bf16.msra.mxu0 %v2195_v7  ;;  %v1522_v7 = vld [vmem:[#allocation8 + $0x300] sm:$0xff] }
 0x739   :  { %2198 = vmatprep.subr.bf16.mxu0 %v2197_v12 }
 0x7d4   :  { %v1370_v42 = vpop.f32.mrb[8].mxu1 }
 0x7d5   :  { %v1374_v51 = vmul.f32 %v1370_v42, %v928_v24  ;;  %v1948_v52 = vpop.f32.mrb[9].mxu1  ;;  %v1504_v42 = vld [vmem:[#allocation8 + $0x270] sm:$0xff] }
 0x7d6   :  { %v2211_v52 = vpack.c.bf16 %v1504_v42, %v1502_v49  ;;  %v1549_v49 = vld [vmem:[#allocation8 + $0x3d8] sm:$0xff] }
 0x7d7   :  { %v1375_v54 = vadd.f32 %v1374_v51, %v2654_v18  ;;  %v1509_v51 = vld [vmem:[#allocation8 + $0x298] sm:$0xff] }
 0x7d8   :  { %v2213_v53 = vpack.c.bf16 %v1509_v51, %v1507_v50  ;;  %v1546_v51 = vld [vmem:[#allocation8 + $0x3c0] sm:$0xff] }
 0x7d9   :  { %v1400_v27 = vcombine.high %v1375_v54, %v1375_v54  ;;  %1376 = vst.msk [vmem:[#allocation3 + $0x1] sm:$0x1] %vm462_vm1, %v1375_v54  ;;  %v1384_v24 = vrot.slane %v1375_v54, %v2675_v29  ;;  %v1511_v54 = vld [vmem:[#allocation8 + $0x2a8] sm:$0xff] }
 0x7da   :  { %v2217_v59 = vpack.c.bf16 %v1513_v55, %v1511_v54  ;;  %v1550_v55 = vld [vmem:[#allocation8 + $0x3e0] sm:$0xff] }
 0x7db   :  { %v1784_v63 = vrot.slane %v1384_v24, 9  ;;  %v1391_v18 = vcombine.high %v1384_v24, %v1384_v24  ;;  %v1407_v30 = vrot.slane %v1400_v27, %v2675_v29  ;;  %v1514_v27 = vld [vmem:[#allocation8 + $0x2c0] sm:$0xff]  ;;  %v1516_v24 = vld [vmem:[#allocation8 + $0x2d0] sm:$0xff] }
 0x7dd   :  { %1387 = vrot.lane.b32.xlu1 %v1784_v63, %s2412_s25  ;;  %v1785_v4 = vrot.slane %v1391_v18, 9  ;;  %1393 = vst.msk [vmem:[#allocation3 + $0x3] sm:$0x1] %vm462_vm1, %v1391_v18  ;;  %1409 = vst.msk [vmem:[#allocation3 + $0x5] sm:$0x1] %vm462_vm1, %v1407_v30  ;;  %v1416_v6 = vcombine.high %v1407_v30, %v1407_v30  ;;  %v1786_v8 = vrot.slane %v1407_v30, 9  ;;  %v2223_v63 = vpack.c.bf16 %v1516_v24, %v1514_v27 }
 0x7de   :  { %v2225_v18 = vpack.c.bf16 %v1521_v62, %v1519_v61  ;;  %v1518_v30 = vld [vmem:[#allocation8 + $0x2e0] sm:$0xff] }
 0x7df   :  { %1396 = vrot.lane.b32.xlu0 %v1785_v4, %s2412_s25  ;;  %1418 = vst.msk [vmem:[#allocation3 + $0x7] sm:$0x1] %vm462_vm1, %v1416_v6  ;;  %v1787_v40 = vrot.slane %v1416_v6, 9  ;;  %v2227_v4 = vpack.c.bf16 %v1520_v0, %v1518_v30  ;;  %v2229_v6 = vpack.c.bf16 %v1525_v2, %v1523_v1 }
 0x7e1   :  { %1412 = vrot.lane.b32.xlu1 %v1786_v8, %s2412_s25  ;;  %v1524_v8 = vld [vmem:[#allocation8 + $0x310] sm:$0xff] }
 0x7e2   :  { %v2231_v11 = vpack.c.bf16 %v1524_v8, %v1522_v7 }
 0x7e3   :  { %1421 = vrot.lane.b32.xlu0 %v1787_v40, %s2412_s25  ;;  %v1527_v40 = vld [vmem:[#allocation8 + $0x328] sm:$0xff] }
 0x7e4   :  { %v2233_v12 = vpack.c.bf16 %v1529_v10, %v1527_v40 }
 0x84f   :  { %v1388_v13 = vpop.permute.xlu1 %1387 }
 0x850   :  { %1390 = vst.msk [vmem:[#allocation3 + $0x1] sm:$0x1] %vm945_vm14, %v1388_v13  ;;  %v1526_v13 = vld [vmem:[#allocation8 + $0x320] sm:$0xff] }
 0x851   :  { %v1397_v14 = vpop.permute.xlu0 %1396 }
 0x852   :  { %1399 = vst.msk [vmem:[#allocation3 + $0x3] sm:$0x1] %vm945_vm14, %v1397_v14  ;;  %v1528_v14 = vld [vmem:[#allocation8 + $0x330] sm:$0xff] }
 0x853   :  { %v1413_v17 = vpop.permute.xlu1 %1412 }
 0x854   :  { %1415 = vst.msk [vmem:[#allocation3 + $0x5] sm:$0x1] %vm945_vm14, %v1413_v17  ;;  %v1531_v17 = vld [vmem:[#allocation8 + $0x348] sm:$0xff] }
 0x855   :  { %v1422_v19 = vpop.permute.xlu0 %1421 }
 0x856   :  { %1424 = vst.msk [vmem:[#allocation3 + $0x7] sm:$0x1] %vm945_vm14, %v1422_v19  ;;  %v1533_v19 = vld [vmem:[#allocation8 + $0x358] sm:$0xff] }
 0x857   :  { %v2237_v20 = vpack.c.bf16 %v1533_v19, %v1531_v17 }
 0x85d   :  { %v1425_v9 = vld [vmem:[#allocation3] sm:$0xff] }
 0x85e   :  { %v1563_v47 = vrot.slane %v1425_v9, %v2675_v29  ;;  %v1556_v25 = vcombine.high %v1425_v9, %v1425_v9  ;;  %v2235_v9 = vpack.c.bf16 %v1528_v14, %v1526_v13 }
 0x860   :  { %v1571_v33 = vcombine.high %v1563_v47, %v1563_v47  ;;  %v2753_v3 = vrot.slane %v1556_v25, %v2675_v29  ;;  %v1505_v29 = vld [vmem:[#allocation8 + $0x278] sm:$0xff]  ;;  %v1535_v25 = vld [vmem:[#allocation8 + $0x368] sm:$0xff] }
 0x861   :  { %v2209_v46 = vpack.c.bf16 %v1505_v29, %v1503_v58  ;;  %v1542_v29 = vld [vmem:[#allocation8 + $0x3a0] sm:$0xff] }
 0x862   :  { %1641 = vmatprep.mubr.f32.mxu0 %v1571_v33  ;;  %v1572_v36 = vcombine.high %v2753_v3, %v2753_v3  ;;  %v2241_v33 = vpack.c.bf16 %v1537_v28, %v1535_v25 }
 0x863   :  { %1642 = vmatmul.mubr.f32.vlgmr.msra.gmra.mrb[20].mxu0 %v1563_v47  ;;  %v1532_v47 = vld [vmem:[#allocation8 + $0x350] sm:$0xff] }
 0x864   :  { %2200 = vmatpush1.bf16.msra.mxu0 %v2199_v34  ;;  %1712 = vmatprep.mubr.f32.mxu0 %v1572_v36  ;;  %v2239_v31 = vpack.c.bf16 %v1532_v47, %v1530_v23  ;;  %v1534_v34 = vld [vmem:[#allocation8 + $0x360] sm:$0xff] }
 0x865   :  { %2202 = vmatprep.subr.bf16.mxu0 %v2201_v48  ;;  %v1536_v48 = vld [vmem:[#allocation8 + $0x370] sm:$0xff] }
 0x866   :  { %v2243_v36 = vpack.c.bf16 %v1536_v48, %v1534_v34 }
 0x868   :  { %2204 = vmatpush1.bf16.msra.mxu0 %v2203_v39  ;;  %v1540_v39 = vld [vmem:[#allocation8 + $0x390] sm:$0xff] }
 0x869   :  { %2206 = vmatprep.subr.bf16.mxu0 %v2205_v43  ;;  %v1543_v43 = vld [vmem:[#allocation8 + $0x3a8] sm:$0xff]  ;;  %v2247_v41 = vpack.c.bf16 %v1540_v39, %v1538_v38 }
 0x86a   :  { %v2249_v58 = vpack.c.bf16 %v1545_v45, %v1543_v43 }
 0x86c   :  { %2208 = vmatpush1.bf16.msra.mxu0 %v2207_v32  ;;  %v1544_v32 = vld [vmem:[#allocation8 + $0x3b0] sm:$0xff] }
 0x86d   :  { %2210 = vmatprep.subr.bf16.mxu0 %v2209_v46  ;;  %v1547_v46 = vld [vmem:[#allocation8 + $0x3c8] sm:$0xff]  ;;  %v2251_v42 = vpack.c.bf16 %v1544_v32, %v1542_v29 }
 0x86e   :  { %v2253_v50 = vpack.c.bf16 %v1549_v49, %v1547_v46 }
 0x870   :  { %2212 = vmatpush1.bf16.msra.mxu0 %v2211_v52  ;;  %v1548_v52 = vld [vmem:[#allocation8 + $0x3d0] sm:$0xff] }
 0x871   :  { %2214 = vmatprep.subr.bf16.mxu0 %v2213_v53  ;;  %v1551_v53 = vld [vmem:[#allocation8 + $0x3e8] sm:$0xff]  ;;  %v2255_v5 = vpack.c.bf16 %v1548_v52, %v1546_v51 }
 0x872   :  { %v2257_v54 = vpack.c.bf16 %v1553_v44, %v1551_v53 }
 0x874   :  { %2216 = vmatpush1.bf16.msra.mxu0 %v2215_v56  ;;  %v1552_v56 = vld [vmem:[#allocation8 + $0x3f0] sm:$0xff] }
 0x875   :  { %2218 = vmatprep.subr.bf16.mxu0 %v2217_v59  ;;  %v2259_v59 = vpack.c.bf16 %v1552_v56, %v1550_v55 }
 0x878   :  { %2220 = vmatpush1.bf16.msra.mxu0 %v2219_v22 }
 0x879   :  { %2222 = vmatprep.subr.bf16.mxu0 %v2221_v26 }
 0x87c   :  { %2224 = vmatpush1.bf16.msra.mxu0 %v2223_v63 }
 0x87d   :  { %2226 = vmatprep.subr.bf16.mxu0 %v2225_v18 }
 0x880   :  { %2228 = vmatpush1.bf16.msra.mxu0 %v2227_v4 }
 0x881   :  { %2230 = vmatprep.subr.bf16.mxu0 %v2229_v6 }
 0x884   :  { %2232 = vmatpush1.bf16.msra.mxu0 %v2231_v11 }
 0x885   :  { %2234 = vmatprep.subr.bf16.mxu0 %v2233_v12 }
 0x888   :  { %2236 = vmatpush1.bf16.msra.mxu0 %v2235_v9 }
 0x889   :  { %2238 = vmatprep.subr.bf16.mxu0 %v2237_v20 }
 0x88c   :  { %2240 = vmatpush1.bf16.msra.mxu0 %v2239_v31 }
 0x88d   :  { %2242 = vmatprep.subr.bf16.mxu0 %v2241_v33 }
 0x890   :  { %2244 = vmatpush1.bf16.msra.mxu0 %v2243_v36 }
 0x891   :  { %2246 = vmatprep.subr.bf16.mxu0 %v2245_v37 }
 0x894   :  { %2248 = vmatpush1.bf16.msra.mxu0 %v2247_v41 }
 0x895   :  { %2250 = vmatprep.subr.bf16.mxu0 %v2249_v58 }
 0x898   :  { %2252 = vmatpush1.bf16.msra.mxu0 %v2251_v42 }
 0x899   :  { %2254 = vmatprep.subr.bf16.mxu0 %v2253_v50 }
 0x89c   :  { %2256 = vmatpush1.bf16.msra.mxu0 %v2255_v5 }
 0x89d   :  { %2258 = vmatprep.subr.bf16.mxu0 %v2257_v54 }
 0x8a0   :  { %2260 = vmatpush1.bf16.msra.mxu0 %v2259_v59 }
 0x8a3   :  { %1713 = vmatmul.mubr.f32.vlgmr.msra.gmra.mrb[20].mxu0 %v2753_v3 }
 0x976   :  { %v1714_v15 = vpop.f32.mrb[20].mxu0 }
 0x977   :  { %v2261_v16 = vadd.f32 %v1714_v15, %v1554_v60  ;;  %v1716_v21 = vpop.f32.mrb[21].mxu0 }
 0x978   :  { %v2262_v22 = vadd.f32 %v1716_v21, %v1554_v60 }
 0x97a   :  { %v1721_v26 = vcombine.low %v2261_v16, %v2262_v22 }
 0x97c   :  { %1788 = vst.sshfl [vmem:[#allocation11] sm:$0x33 pattern:$0x76325410] %v1721_v26 }
 0x97d   :  { %2385 = shalt.err (!%p2382_p11)
}
 0x97e   :  { %s2386_s7 = scalar_lea.hbm %s2779_s9, 64 }
 0x97f   :  { %p2387_p12 = scmp.ne.s32.totalorder %s2779_s9, %s2386_s7  ;;  %p2390_p13 = scmp.lt.u32.totalorder %s2386_s7, %s2779_s9 }
 0x981   :  { %p2392_p0 = pnand %p2390_p13, %p2387_p12 }
 0x983   :  { %2395 = shalt.err (!%p2392_p0)
}
 0x984   :  { %1740 = dma.vmem_to_hbm [thread:$0]  %s1738_s16, 64, %s2779_s9, [#allocation6]  }
 0x985   :  { %2402 = dma.done.wait [#allocation6], 64  }
 0x986   :  { %2403 = vsyncadd [#allocation6], 4294967232 }
 0x987   :  { %1744 = vsyncpa [#allocation5], 1 }
 0x988   :  { %1745 = vsyncpa [#allocation9], 1 }
 0x989   :  { %1746 = vsyncpa [#allocation6], 1 }
 0x98a   :  { %1747 = vsyncpa [#allocation7], 1 }

</bundles_post_ra>
